<compile_context>
chip_gen: v7x
topology: tpu7x:2x2x1
jax: 0.10.0
libtpu: 0.0.40
codegen_flags: <defaults>
</compile_context>

<pallas_src>
import functools

import jax
import jax.numpy as jnp
import numpy as np
from jax.experimental import pallas as pl
from jax.experimental.pallas import tpu as pltpu

EPS = 1e-5  # PyTorch GroupNorm default eps


# ---------------------------------------------------------------------------
# Fused kernel: conv1(3x3,p=1) + GN + ReLU + *short + convT(2,2,s2) + GN + embs
# One grid step processes NB batch samples entirely in VMEM.
# GroupNorm group means are computed as (per-channel sums) @ A, where A is a
# group-averaging matrix (already scaled by 1/elements-per-group).
# ---------------------------------------------------------------------------
def _fused_kernel(x_ref, short_ref, pos_ref, cls_ref,
                  w1_ref, b1_ref, g1_ref, be1_ref, A1_ref,
                  w2_ref, b2_ref, g2_ref, be2_ref, A2_ref,
                  wp_ref, bp_ref, wc_ref, bc_ref,
                  o_ref, xpad_ref, im2col_ref, *, NB, H, W, Cin, Cout):
    HW = H * W

    # -------- stage 1: 3x3 conv (pad=1) as ONE im2col matmul -----------------
    # in-kernel zero padding (border ring), interior overwritten from x_ref
    xpad_ref[...] = jnp.zeros_like(xpad_ref)
    xpad_ref[:, 1:H + 1, 1:W + 1, :] = x_ref[...]

    # build (NB, H, W, 9*Cin) im2col slab: one lane-offset store per tap
    for kh in range(3):
        for kw in range(3):
            k = kh * 3 + kw
            im2col_ref[:, :, :, k * Cin:(k + 1) * Cin] = (
                xpad_ref[:, kh:kh + H, kw:kw + W, :])

    patch = im2col_ref[...].reshape(NB * HW, 9 * Cin)
    acc = jnp.dot(patch, w1_ref[...],
                  preferred_element_type=jnp.float32) + b1_ref[...]

    # GroupNorm(8) per sample via segmented sums + group-averaging matmul
    acc3 = acc.reshape(NB, HW, Cin)
    s1 = jnp.sum(acc3, axis=1)                        # (NB, Cin)
    ss1 = jnp.sum(acc3 * acc3, axis=1)                # (NB, Cin)
    mean1 = jnp.dot(s1, A1_ref[...], preferred_element_type=jnp.float32)
    msq1 = jnp.dot(ss1, A1_ref[...], preferred_element_type=jnp.float32)
    inv1 = jax.lax.rsqrt(msq1 - mean1 * mean1 + EPS)  # (NB, Cin)

    h = (acc3 - mean1[:, None, :]) * inv1[:, None, :]
    h = h * g1_ref[...].reshape(1, 1, Cin) + be1_ref[...].reshape(1, 1, Cin)
    h = jnp.maximum(h, 0.0) * short_ref[...]          # (NB, HW, Cin)

    # -------- stage 2: ConvTranspose(2,2,s=2) as ONE matmul -------------------
    # all 4 sub-pixel outputs (lane-dense 4*Cout) in a single MXU product
    y = jnp.dot(h.reshape(NB * HW, Cin), w2_ref[...],
                preferred_element_type=jnp.float32) + b2_ref[...]
    # stage raw (pre-GN) activations in the output block, re-normalize in place
    o_ref[...] = y.reshape(NB, HW, 4 * Cout)

    y3 = o_ref[...]
    s2 = jnp.sum(y3, axis=1)                          # (NB, 4*Cout)
    ss2 = jnp.sum(y3 * y3, axis=1)
    mean2 = jnp.dot(s2, A2_ref[...], preferred_element_type=jnp.float32)
    msq2 = jnp.dot(ss2, A2_ref[...], preferred_element_type=jnp.float32)
    inv2 = jax.lax.rsqrt(msq2 - mean2 * mean2 + EPS)  # (NB, 4*Cout)

    # embedding projections (Linear + ReLU) folded into the same kernel
    pe = jnp.maximum(
        jnp.dot(pos_ref[...], wp_ref[...], preferred_element_type=jnp.float32)
        + bp_ref[...], 0.0)                           # (NB, Cout)
    ce = jnp.maximum(
        jnp.dot(cls_ref[...], wc_ref[...], preferred_element_type=jnp.float32)
        + bc_ref[...], 0.0)                           # (NB, Cout)
    add = pe + ce                                     # spatially constant
    add4 = jnp.concatenate([add, add, add, add], axis=1)   # (NB, 4*Cout)

    # fold GN affine + mean-shift + embedding add into one scale/shift pass
    scale = inv2 * g2_ref[...]                        # (NB, 4*Cout)
    shift = be2_ref[...] - mean2 * scale + add4       # (NB, 4*Cout)
    o_ref[...] = o_ref[...] * scale[:, None, :] + shift[:, None, :]


# ---------------------------------------------------------------------------
# Helpers / wrapper
# ---------------------------------------------------------------------------
def _group_avg_matrix(num_cols, channels, groups, count):
    """A[i,j] = 1/(Cg*count) iff columns i, j belong to the same GN group,
    where a column's channel id is (col % channels)."""
    cg = channels // groups
    g = (jnp.arange(num_cols) % channels) // cg
    return (g[:, None] == g[None, :]).astype(jnp.float32) / (cg * count)


def mask_up_conv(x, short, pos_emb, class_emb, p, *, batch_block=None):
    """x, short: (N, Cin, H, W) NCHW; pos_emb/class_emb: (N, E). Returns NCHW."""
    N, Cin, H, W = x.shape
    Cout = p["w2"].shape[1]
    E = pos_emb.shape[1]
    HW = H * W

    # Fold batch into the matmul M dimension: pick NB so NB*HW feeds the MXU,
    # while keeping blocks small enough for VMEM at production shapes.
    # TODO(synk): at production shapes also tile the HW axis / set vmem_limit_bytes
    # explicitly for v7x's 64 MiB VMEM.
    if batch_block is None:
        batch_block = max(1, min(N, max(1, 256 // HW)))
        while N % batch_block:
            batch_block -= 1
    NB = batch_block
    assert N % NB == 0

    # --- layout glue (NCHW -> channels-last) --------------------------------
    x_nhwc = jnp.transpose(x, (0, 2, 3, 1))                       # (N,H,W,Cin)
    short_flat = jnp.transpose(short, (0, 2, 3, 1)).reshape(N, HW, Cin)

    # conv1 weight (Cin, Cin, 3, 3) -> (9*Cin, Cin); row = (kh*3+kw)*Cin + ci
    W1 = jnp.transpose(p["w1"], (2, 3, 1, 0)).reshape(9 * Cin, Cin)
    # convT weight (Cin, Cout, 2, 2) -> (Cin, 4*Cout); col = (a*2+b)*Cout + co
    W2 = jnp.transpose(p["w2"], (0, 2, 3, 1)).reshape(Cin, 4 * Cout)

    A1 = _group_avg_matrix(Cin, Cin, 8, HW)                       # (Cin, Cin)
    A2 = _group_avg_matrix(4 * Cout, Cout, 8, 4 * HW)             # (4Cout,4Cout)

    b1 = p["b1"][None, :]
    g1 = p["g1"][None, :]
    be1 = p["be1"][None, :]
    b2 = jnp.tile(p["b2"], 4)[None, :]
    g2 = jnp.tile(p["g2"], 4)[None, :]
    be2 = jnp.tile(p["be2"], 4)[None, :]
    wp_t = p["wp"].T
    bp = p["bp"][None, :]
    wc_t = p["wc"].T
    bc = p["bc"][None, :]

    y = pl.pallas_call(
        functools.partial(_fused_kernel, NB=NB, H=H, W=W, Cin=Cin, Cout=Cout),
        out_shape=jax.ShapeDtypeStruct((N, HW, 4 * Cout), jnp.float32),
        grid=(N // NB,),
        in_specs=[
            pl.BlockSpec((NB, H, W, Cin), lambda n: (n, 0, 0, 0)),   # x
            pl.BlockSpec((NB, HW, Cin), lambda n: (n, 0, 0)),        # short
            pl.BlockSpec((NB, E), lambda n: (n, 0)),                 # pos_emb
            pl.BlockSpec((NB, E), lambda n: (n, 0)),                 # class_emb
            pl.BlockSpec((9 * Cin, Cin), lambda n: (0, 0)),          # W1
            pl.BlockSpec((1, Cin), lambda n: (0, 0)),                # b1
            pl.BlockSpec((1, Cin), lambda n: (0, 0)),                # gamma1
            pl.BlockSpec((1, Cin), lambda n: (0, 0)),                # beta1
            pl.BlockSpec((Cin, Cin), lambda n: (0, 0)),              # A1
            pl.BlockSpec((Cin, 4 * Cout), lambda n: (0, 0)),         # W2
            pl.BlockSpec((1, 4 * Cout), lambda n: (0, 0)),           # b2 (tiled)
            pl.BlockSpec((1, 4 * Cout), lambda n: (0, 0)),           # gamma2
            pl.BlockSpec((1, 4 * Cout), lambda n: (0, 0)),           # beta2
            pl.BlockSpec((4 * Cout, 4 * Cout), lambda n: (0, 0)),    # A2
            pl.BlockSpec((E, Cout), lambda n: (0, 0)),               # wp^T
            pl.BlockSpec((1, Cout), lambda n: (0, 0)),               # bp
            pl.BlockSpec((E, Cout), lambda n: (0, 0)),               # wc^T
            pl.BlockSpec((1, Cout), lambda n: (0, 0)),               # bc
        ],
        out_specs=pl.BlockSpec((NB, HW, 4 * Cout), lambda n: (n, 0, 0)),
        scratch_shapes=[
            pltpu.VMEM((NB, H + 2, W + 2, Cin), jnp.float32),        # padded x
            pltpu.VMEM((NB, H, W, 9 * Cin), jnp.float32),            # im2col
        ],
        compiler_params=pltpu.CompilerParams(
            dimension_semantics=("parallel",)),
    )(x_nhwc, short_flat, pos_emb, class_emb, W1, b1, g1, be1, A1,
      W2, b2, g2, be2, A2, wp_t, bp, wc_t, bc)

    # --- single un-interleave + NCHW permute --------------------------------
    # y[n, i*W+j, (a*2+b)*Cout + co] = out[n, co, 2i+a, 2j+b]
    y = y.reshape(N, H, W, 2, 2, Cout)            # (n, i, j, a, b, c)
    y = jnp.transpose(y, (0, 5, 1, 3, 2, 4))      # (n, c, i, a, j, b)
    return y.reshape(N, Cout, 2 * H, 2 * W)


# ---------------------------------------------------------------------------
# Pure-JAX reference (mirrors PyTorch forward semantics) for validation
# ---------------------------------------------------------------------------
def reference(x, short, pos_emb, class_emb, p):
    hi = jax.lax.Precision.HIGHEST

    def gn(v, gamma, beta, G):
        N, C, H, W = v.shape
        vg = v.reshape(N, G, C // G, H, W)
        m = vg.mean(axis=(2, 3, 4), keepdims=True)
        var = vg.var(axis=(2, 3, 4), keepdims=True)
        vn = ((vg - m) / jnp.sqrt(var + EPS)).reshape(N, C, H, W)
        return vn * gamma[None, :, None, None] + beta[None, :, None, None]

    h = jax.lax.conv_general_dilated(
        x, p["w1"], (1, 1), ((1, 1), (1, 1)),
        dimension_numbers=("NCHW", "OIHW", "NCHW"), precision=hi)
    h = h + p["b1"][None, :, None, None]
    h = jnp.maximum(gn(h, p["g1"], p["be1"], 8), 0.0) * short

    # ConvTranspose2d(k=2,s=2,p=0): y[n,co,2i+a,2j+b] = sum_ci h[n,ci,i,j]*w2[ci,co,a,b]
    t = jnp.einsum("ncij,cdab->ndiajb", h, p["w2"], precision=hi)
    N, Co, H, _, W, _ = t.shape
    t = t.reshape(N, Co, 2 * H, 2 * W) + p["b2"][None, :, None, None]
    t = gn(t, p["g2"], p["be2"], 8)

    pe = jnp.maximum(pos_emb @ p["wp"].T + p["bp"], 0.0)
    ce = jnp.maximum(class_emb @ p["wc"].T + p["bc"], 0.0)
    return t + pe[:, :, None, None] + ce[:, :, None, None]


# ---------------------------------------------------------------------------
if __name__ == "__main__":
    N, Cin, Cout, E, H, W = 2, 16, 16, 32, 8, 8

    key = jax.random.PRNGKey(0)
    ks = jax.random.split(key, 20)

    def u(k, shape, fan_in):
        b = 1.0 / np.sqrt(fan_in)
        return jax.random.uniform(k, shape, jnp.float32, -b, b)

    params = {
        "w1": u(ks[0], (Cin, Cin, 3, 3), Cin * 9),
        "b1": u(ks[1], (Cin,), Cin * 9),
        "g1": jax.random.uniform(ks[2], (Cin,), jnp.float32, 0.5, 1.5),
        "be1": jax.random.uniform(ks[3], (Cin,), jnp.float32, -0.5, 0.5),
        "w2": u(ks[4], (Cin, Cout, 2, 2), Cin * 4),
        "b2": u(ks[5], (Cout,), Cin * 4),
        "g2": jax.random.uniform(ks[6], (Cout,), jnp.float32, 0.5, 1.5),
        "be2": jax.random.uniform(ks[7], (Cout,), jnp.float32, -0.5, 0.5),
        "wp": u(ks[8], (Cout, E), E),
        "bp": u(ks[9], (Cout,), E),
        "wc": u(ks[10], (Cout, E), E),
        "bc": u(ks[11], (Cout,), E),
    }

    x = jax.random.normal(ks[12], (N, Cin, H, W), jnp.float32)
    short = jax.random.normal(ks[13], (N, Cin, H, W), jnp.float32)
    pos_emb = jax.random.normal(ks[14], (N, E), jnp.float32)
    class_emb = jax.random.normal(ks[15], (N, E), jnp.float32)

    out = jax.jit(mask_up_conv)(x, short, pos_emb, class_emb, params)
    out = jax.block_until_ready(out)

    ref = reference(x, short, pos_emb, class_emb, params)
    assert out.shape == (N, Cout, 2 * H, 2 * W), out.shape
    np.testing.assert_allclose(np.asarray(out), np.asarray(ref),
                               rtol=2e-3, atol=2e-3)
    print("KERNEL_OK")
</pallas_src>

<mosaic_0001>
module attributes {stable_mosaic.version = 11 : i64} {
  func.func @_fused_kernel(%arg0: i32, %arg1: memref<2x8x8x16xf32, #tpu.memory_space<vmem>>, %arg2: memref<2x64x16xf32, #tpu.memory_space<vmem>>, %arg3: memref<2x32xf32, #tpu.memory_space<vmem>>, %arg4: memref<2x32xf32, #tpu.memory_space<vmem>>, %arg5: memref<144x16xf32, #tpu.memory_space<vmem>>, %arg6: memref<1x16xf32, #tpu.memory_space<vmem>>, %arg7: memref<1x16xf32, #tpu.memory_space<vmem>>, %arg8: memref<1x16xf32, #tpu.memory_space<vmem>>, %arg9: memref<16x16xf32, #tpu.memory_space<vmem>>, %arg10: memref<16x64xf32, #tpu.memory_space<vmem>>, %arg11: memref<1x64xf32, #tpu.memory_space<vmem>>, %arg12: memref<1x64xf32, #tpu.memory_space<vmem>>, %arg13: memref<1x64xf32, #tpu.memory_space<vmem>>, %arg14: memref<64x64xf32, #tpu.memory_space<vmem>>, %arg15: memref<32x16xf32, #tpu.memory_space<vmem>>, %arg16: memref<1x16xf32, #tpu.memory_space<vmem>>, %arg17: memref<32x16xf32, #tpu.memory_space<vmem>>, %arg18: memref<1x16xf32, #tpu.memory_space<vmem>>, %arg19: memref<2x64x64xf32, #tpu.memory_space<vmem>>, %arg20: memref<2x10x10x16xf32, #tpu.memory_space<vmem>>, %arg21: memref<2x8x8x144xf32, #tpu.memory_space<vmem>>) attributes {dimension_semantics = [#tpu.dimension_semantics<parallel>], iteration_bounds = array<i64: 1>, scalar_prefetch = 0 : i64, scratch_operands = 2 : i64, tpu.core_type = #tpu.core_type<tc>, window_params = [{transform_indices = @transform_0, window_bounds = array<i64: 2, 8, 8, 16>}, {transform_indices = @transform_1, window_bounds = array<i64: 2, 64, 16>}, {transform_indices = @transform_2, window_bounds = array<i64: 2, 32>}, {transform_indices = @transform_3, window_bounds = array<i64: 2, 32>}, {pipeline_mode = #tpu.pipeline_mode<synchronous>, transform_indices = @transform_4, window_bounds = array<i64: 144, 16>}, {pipeline_mode = #tpu.pipeline_mode<synchronous>, transform_indices = @transform_5, window_bounds = array<i64: 1, 16>}, {pipeline_mode = #tpu.pipeline_mode<synchronous>, transform_indices = @transform_6, window_bounds = array<i64: 1, 16>}, {pipeline_mode = #tpu.pipeline_mode<synchronous>, transform_indices = @transform_7, window_bounds = array<i64: 1, 16>}, {pipeline_mode = #tpu.pipeline_mode<synchronous>, transform_indices = @transform_8, window_bounds = array<i64: 16, 16>}, {pipeline_mode = #tpu.pipeline_mode<synchronous>, transform_indices = @transform_9, window_bounds = array<i64: 16, 64>}, {pipeline_mode = #tpu.pipeline_mode<synchronous>, transform_indices = @transform_10, window_bounds = array<i64: 1, 64>}, {pipeline_mode = #tpu.pipeline_mode<synchronous>, transform_indices = @transform_11, window_bounds = array<i64: 1, 64>}, {pipeline_mode = #tpu.pipeline_mode<synchronous>, transform_indices = @transform_12, window_bounds = array<i64: 1, 64>}, {pipeline_mode = #tpu.pipeline_mode<synchronous>, transform_indices = @transform_13, window_bounds = array<i64: 64, 64>}, {pipeline_mode = #tpu.pipeline_mode<synchronous>, transform_indices = @transform_14, window_bounds = array<i64: 32, 16>}, {pipeline_mode = #tpu.pipeline_mode<synchronous>, transform_indices = @transform_15, window_bounds = array<i64: 1, 16>}, {pipeline_mode = #tpu.pipeline_mode<synchronous>, transform_indices = @transform_16, window_bounds = array<i64: 32, 16>}, {pipeline_mode = #tpu.pipeline_mode<synchronous>, transform_indices = @transform_17, window_bounds = array<i64: 1, 16>}, {transform_indices = @transform_18, window_bounds = array<i64: 2, 64, 64>}]} {
    %cst = arith.constant 0.000000e+00 : f32
    %0 = vector.broadcast %cst : f32 to vector<2x10x10x16xf32>
    %c0 = arith.constant 0 : index
    %c0_0 = arith.constant 0 : index
    %c0_1 = arith.constant 0 : index
    %c0_2 = arith.constant 0 : index
    %1 = vector.load %arg20[%c0, %c0_0, %c0_1, %c0_2] : memref<2x10x10x16xf32, #tpu.memory_space<vmem>>, vector<2x10x10x16xf32>
    tpu.vector_store %arg20[%c0, %c0_0, %c0_1, %c0_2], %0 {strides = array<i32>} : memref<2x10x10x16xf32, #tpu.memory_space<vmem>>, vector<2x10x10x16xf32>,
    %c0_3 = arith.constant 0 : index
    %c0_4 = arith.constant 0 : index
    %c0_5 = arith.constant 0 : index
    %c0_6 = arith.constant 0 : index
    %2 = vector.load %arg1[%c0_3, %c0_4, %c0_5, %c0_6] : memref<2x8x8x16xf32, #tpu.memory_space<vmem>>, vector<2x8x8x16xf32>
    %c0_7 = arith.constant 0 : index
    %c1 = arith.constant 1 : index
    %c1_8 = arith.constant 1 : index
    %c0_9 = arith.constant 0 : index
    %3 = vector.load %arg20[%c0_7, %c1, %c1_8, %c0_9] : memref<2x10x10x16xf32, #tpu.memory_space<vmem>>, vector<2x8x8x16xf32>
    tpu.vector_store %arg20[%c0_7, %c1, %c1_8, %c0_9], %2 {strides = array<i32>} : memref<2x10x10x16xf32, #tpu.memory_space<vmem>>, vector<2x8x8x16xf32>,
    %c0_10 = arith.constant 0 : index
    %c0_11 = arith.constant 0 : index
    %c0_12 = arith.constant 0 : index
    %c0_13 = arith.constant 0 : index
    %4 = vector.load %arg20[%c0_10, %c0_11, %c0_12, %c0_13] : memref<2x10x10x16xf32, #tpu.memory_space<vmem>>, vector<2x8x8x16xf32>
    %c0_14 = arith.constant 0 : index
    %c0_15 = arith.constant 0 : index
    %c0_16 = arith.constant 0 : index
    %c0_17 = arith.constant 0 : index
    %5 = vector.load %arg21[%c0_14, %c0_15, %c0_16, %c0_17] : memref<2x8x8x144xf32, #tpu.memory_space<vmem>>, vector<2x8x8x16xf32>
    tpu.vector_store %arg21[%c0_14, %c0_15, %c0_16, %c0_17], %4 {strides = array<i32>} : memref<2x8x8x144xf32, #tpu.memory_space<vmem>>, vector<2x8x8x16xf32>,
    %c0_18 = arith.constant 0 : index
    %c0_19 = arith.constant 0 : index
    %c1_20 = arith.constant 1 : index
    %c0_21 = arith.constant 0 : index
    %6 = vector.load %arg20[%c0_18, %c0_19, %c1_20, %c0_21] : memref<2x10x10x16xf32, #tpu.memory_space<vmem>>, vector<2x8x8x16xf32>
    %c0_22 = arith.constant 0 : index
    %c0_23 = arith.constant 0 : index
    %c0_24 = arith.constant 0 : index
    %c16 = arith.constant 16 : index
    %7 = vector.load %arg21[%c0_22, %c0_23, %c0_24, %c16] : memref<2x8x8x144xf32, #tpu.memory_space<vmem>>, vector<2x8x8x16xf32>
    tpu.vector_store %arg21[%c0_22, %c0_23, %c0_24, %c16], %6 {strides = array<i32>} : memref<2x8x8x144xf32, #tpu.memory_space<vmem>>, vector<2x8x8x16xf32>,
    %c0_25 = arith.constant 0 : index
    %c0_26 = arith.constant 0 : index
    %c2 = arith.constant 2 : index
    %c0_27 = arith.constant 0 : index
    %8 = vector.load %arg20[%c0_25, %c0_26, %c2, %c0_27] : memref<2x10x10x16xf32, #tpu.memory_space<vmem>>, vector<2x8x8x16xf32>
    %c0_28 = arith.constant 0 : index
    %c0_29 = arith.constant 0 : index
    %c0_30 = arith.constant 0 : index
    %c32 = arith.constant 32 : index
    %9 = vector.load %arg21[%c0_28, %c0_29, %c0_30, %c32] : memref<2x8x8x144xf32, #tpu.memory_space<vmem>>, vector<2x8x8x16xf32>
    tpu.vector_store %arg21[%c0_28, %c0_29, %c0_30, %c32], %8 {strides = array<i32>} : memref<2x8x8x144xf32, #tpu.memory_space<vmem>>, vector<2x8x8x16xf32>,
    %c0_31 = arith.constant 0 : index
    %c1_32 = arith.constant 1 : index
    %c0_33 = arith.constant 0 : index
    %c0_34 = arith.constant 0 : index
    %10 = vector.load %arg20[%c0_31, %c1_32, %c0_33, %c0_34] : memref<2x10x10x16xf32, #tpu.memory_space<vmem>>, vector<2x8x8x16xf32>
    %c0_35 = arith.constant 0 : index
    %c0_36 = arith.constant 0 : index
    %c0_37 = arith.constant 0 : index
    %c48 = arith.constant 48 : index
    %11 = vector.load %arg21[%c0_35, %c0_36, %c0_37, %c48] : memref<2x8x8x144xf32, #tpu.memory_space<vmem>>, vector<2x8x8x16xf32>
    tpu.vector_store %arg21[%c0_35, %c0_36, %c0_37, %c48], %10 {strides = array<i32>} : memref<2x8x8x144xf32, #tpu.memory_space<vmem>>, vector<2x8x8x16xf32>,
    %c0_38 = arith.constant 0 : index
    %c1_39 = arith.constant 1 : index
    %c1_40 = arith.constant 1 : index
    %c0_41 = arith.constant 0 : index
    %12 = vector.load %arg20[%c0_38, %c1_39, %c1_40, %c0_41] : memref<2x10x10x16xf32, #tpu.memory_space<vmem>>, vector<2x8x8x16xf32>
    %c0_42 = arith.constant 0 : index
    %c0_43 = arith.constant 0 : index
    %c0_44 = arith.constant 0 : index
    %c64 = arith.constant 64 : index
    %13 = vector.load %arg21[%c0_42, %c0_43, %c0_44, %c64] : memref<2x8x8x144xf32, #tpu.memory_space<vmem>>, vector<2x8x8x16xf32>
    tpu.vector_store %arg21[%c0_42, %c0_43, %c0_44, %c64], %12 {strides = array<i32>} : memref<2x8x8x144xf32, #tpu.memory_space<vmem>>, vector<2x8x8x16xf32>,
    %c0_45 = arith.constant 0 : index
    %c1_46 = arith.constant 1 : index
    %c2_47 = arith.constant 2 : index
    %c0_48 = arith.constant 0 : index
    %14 = vector.load %arg20[%c0_45, %c1_46, %c2_47, %c0_48] : memref<2x10x10x16xf32, #tpu.memory_space<vmem>>, vector<2x8x8x16xf32>
    %c0_49 = arith.constant 0 : index
    %c0_50 = arith.constant 0 : index
    %c0_51 = arith.constant 0 : index
    %c80 = arith.constant 80 : index
    %15 = vector.load %arg21[%c0_49, %c0_50, %c0_51, %c80] : memref<2x8x8x144xf32, #tpu.memory_space<vmem>>, vector<2x8x8x16xf32>
    tpu.vector_store %arg21[%c0_49, %c0_50, %c0_51, %c80], %14 {strides = array<i32>} : memref<2x8x8x144xf32, #tpu.memory_space<vmem>>, vector<2x8x8x16xf32>,
    %c0_52 = arith.constant 0 : index
    %c2_53 = arith.constant 2 : index
    %c0_54 = arith.constant 0 : index
    %c0_55 = arith.constant 0 : index
    %16 = vector.load %arg20[%c0_52, %c2_53, %c0_54, %c0_55] : memref<2x10x10x16xf32, #tpu.memory_space<vmem>>, vector<2x8x8x16xf32>
    %c0_56 = arith.constant 0 : index
    %c0_57 = arith.constant 0 : index
    %c0_58 = arith.constant 0 : index
    %c96 = arith.constant 96 : index
    %17 = vector.load %arg21[%c0_56, %c0_57, %c0_58, %c96] : memref<2x8x8x144xf32, #tpu.memory_space<vmem>>, vector<2x8x8x16xf32>
    tpu.vector_store %arg21[%c0_56, %c0_57, %c0_58, %c96], %16 {strides = array<i32>} : memref<2x8x8x144xf32, #tpu.memory_space<vmem>>, vector<2x8x8x16xf32>,
    %c0_59 = arith.constant 0 : index
    %c2_60 = arith.constant 2 : index
    %c1_61 = arith.constant 1 : index
    %c0_62 = arith.constant 0 : index
    %18 = vector.load %arg20[%c0_59, %c2_60, %c1_61, %c0_62] : memref<2x10x10x16xf32, #tpu.memory_space<vmem>>, vector<2x8x8x16xf32>
    %c0_63 = arith.constant 0 : index
    %c0_64 = arith.constant 0 : index
    %c0_65 = arith.constant 0 : index
    %c112 = arith.constant 112 : index
    %19 = vector.load %arg21[%c0_63, %c0_64, %c0_65, %c112] : memref<2x8x8x144xf32, #tpu.memory_space<vmem>>, vector<2x8x8x16xf32>
    tpu.vector_store %arg21[%c0_63, %c0_64, %c0_65, %c112], %18 {strides = array<i32>} : memref<2x8x8x144xf32, #tpu.memory_space<vmem>>, vector<2x8x8x16xf32>,
    %c0_66 = arith.constant 0 : index
    %c2_67 = arith.constant 2 : index
    %c2_68 = arith.constant 2 : index
    %c0_69 = arith.constant 0 : index
    %20 = vector.load %arg20[%c0_66, %c2_67, %c2_68, %c0_69] : memref<2x10x10x16xf32, #tpu.memory_space<vmem>>, vector<2x8x8x16xf32>
    %c0_70 = arith.constant 0 : index
    %c0_71 = arith.constant 0 : index
    %c0_72 = arith.constant 0 : index
    %c128 = arith.constant 128 : index
    %21 = vector.load %arg21[%c0_70, %c0_71, %c0_72, %c128] : memref<2x8x8x144xf32, #tpu.memory_space<vmem>>, vector<2x8x8x16xf32>
    tpu.vector_store %arg21[%c0_70, %c0_71, %c0_72, %c128], %20 {strides = array<i32>} : memref<2x8x8x144xf32, #tpu.memory_space<vmem>>, vector<2x8x8x16xf32>,
    %c0_73 = arith.constant 0 : index
    %c0_74 = arith.constant 0 : index
    %c0_75 = arith.constant 0 : index
    %c0_76 = arith.constant 0 : index
    %22 = vector.load %arg21[%c0_73, %c0_74, %c0_75, %c0_76] : memref<2x8x8x144xf32, #tpu.memory_space<vmem>>, vector<2x8x8x144xf32>
    %23 = vector.shape_cast %22 : vector<2x8x8x144xf32> to vector<128x144xf32>
    %c0_77 = arith.constant 0 : index
    %c0_78 = arith.constant 0 : index
    %24 = vector.load %arg5[%c0_77, %c0_78] : memref<144x16xf32, #tpu.memory_space<vmem>>, vector<144x16xf32>
    %cst_79 = arith.constant dense<0.000000e+00> : vector<128x16xf32>
    %25 = tpu.matmul %23, %24, %cst_79 {dimension_numbers = #tpu.dot_dimension_numbers<[1], [0], [0], [1], [0, 0, 1, 1], [], []>} : vector<128x144xf32>, vector<144x16xf32>, vector<128x16xf32> -> vector<128x16xf32>
    %c0_80 = arith.constant 0 : index
    %c0_81 = arith.constant 0 : index
    %26 = vector.load %arg6[%c0_80, %c0_81] : memref<1x16xf32, #tpu.memory_space<vmem>>, vector<1x16xf32>
    %27 = vector.broadcast %26 : vector<1x16xf32> to vector<128x16xf32>
    %28 = arith.addf %25, %27 : vector<128x16xf32>
    %29 = vector.shape_cast %28 : vector<128x16xf32> to vector<2x64x16xf32>
    %cst_82 = arith.constant dense<0.000000e+00> : vector<2x16xf32>
    %30 = vector.multi_reduction <add>, %29, %cst_82 [1] : vector<2x64x16xf32> to vector<2x16xf32>
    %31 = arith.mulf %29, %29 : vector<2x64x16xf32>
    %cst_83 = arith.constant dense<0.000000e+00> : vector<2x16xf32>
    %32 = vector.multi_reduction <add>, %31, %cst_83 [1] : vector<2x64x16xf32> to vector<2x16xf32>
    %c0_84 = arith.constant 0 : index
    %c0_85 = arith.constant 0 : index
    %33 = vector.load %arg9[%c0_84, %c0_85] : memref<16x16xf32, #tpu.memory_space<vmem>>, vector<16x16xf32>
    %cst_86 = arith.constant dense<0.000000e+00> : vector<2x16xf32>
    %34 = tpu.matmul %30, %33, %cst_86 {dimension_numbers = #tpu.dot_dimension_numbers<[1], [0], [0], [1], [0, 0, 1, 1], [], []>} : vector<2x16xf32>, vector<16x16xf32>, vector<2x16xf32> -> vector<2x16xf32>
    %c0_87 = arith.constant 0 : index
    %c0_88 = arith.constant 0 : index
    %35 = vector.load %arg9[%c0_87, %c0_88] : memref<16x16xf32, #tpu.memory_space<vmem>>, vector<16x16xf32>
    %cst_89 = arith.constant dense<0.000000e+00> : vector<2x16xf32>
    %36 = tpu.matmul %32, %35, %cst_89 {dimension_numbers = #tpu.dot_dimension_numbers<[1], [0], [0], [1], [0, 0, 1, 1], [], []>} : vector<2x16xf32>, vector<16x16xf32>, vector<2x16xf32> -> vector<2x16xf32>
    %37 = arith.mulf %34, %34 : vector<2x16xf32>
    %38 = arith.subf %36, %37 : vector<2x16xf32>
    %cst_90 = arith.constant 9.99999974E-6 : f32
    %39 = vector.broadcast %cst_90 : f32 to vector<2x16xf32>
    %40 = arith.addf %38, %39 : vector<2x16xf32>
    %41 = math.rsqrt %40 : vector<2x16xf32>
    %42 = vector.shape_cast %34 : vector<2x16xf32> to vector<2x1x16xf32>
    %43 = vector.broadcast %42 : vector<2x1x16xf32> to vector<2x64x16xf32>
    %44 = arith.subf %29, %43 : vector<2x64x16xf32>
    %45 = vector.shape_cast %41 : vector<2x16xf32> to vector<2x1x16xf32>
    %46 = vector.broadcast %45 : vector<2x1x16xf32> to vector<2x64x16xf32>
    %47 = arith.mulf %44, %46 : vector<2x64x16xf32>
    %c0_91 = arith.constant 0 : index
    %c0_92 = arith.constant 0 : index
    %48 = vector.load %arg7[%c0_91, %c0_92] : memref<1x16xf32, #tpu.memory_space<vmem>>, vector<1x16xf32>
    %49 = vector.shape_cast %48 : vector<1x16xf32> to vector<1x1x16xf32>
    %50 = vector.broadcast %49 : vector<1x1x16xf32> to vector<2x64x16xf32>
    %51 = arith.mulf %47, %50 : vector<2x64x16xf32>
    %c0_93 = arith.constant 0 : index
    %c0_94 = arith.constant 0 : index
    %52 = vector.load %arg8[%c0_93, %c0_94] : memref<1x16xf32, #tpu.memory_space<vmem>>, vector<1x16xf32>
    %53 = vector.shape_cast %52 : vector<1x16xf32> to vector<1x1x16xf32>
    %54 = vector.broadcast %53 : vector<1x1x16xf32> to vector<2x64x16xf32>
    %55 = arith.addf %51, %54 : vector<2x64x16xf32>
    %cst_95 = arith.constant 0.000000e+00 : f32
    %56 = vector.broadcast %cst_95 : f32 to vector<2x64x16xf32>
    %57 = arith.maximumf %55, %56 : vector<2x64x16xf32>
    %c0_96 = arith.constant 0 : index
    %c0_97 = arith.constant 0 : index
    %c0_98 = arith.constant 0 : index
    %58 = vector.load %arg2[%c0_96, %c0_97, %c0_98] : memref<2x64x16xf32, #tpu.memory_space<vmem>>, vector<2x64x16xf32>
    %59 = arith.mulf %57, %58 : vector<2x64x16xf32>
    %60 = vector.shape_cast %59 : vector<2x64x16xf32> to vector<128x16xf32>
    %c0_99 = arith.constant 0 : index
    %c0_100 = arith.constant 0 : index
    %61 = vector.load %arg10[%c0_99, %c0_100] : memref<16x64xf32, #tpu.memory_space<vmem>>, vector<16x64xf32>
    %cst_101 = arith.constant dense<0.000000e+00> : vector<128x64xf32>
    %62 = tpu.matmul %60, %61, %cst_101 {dimension_numbers = #tpu.dot_dimension_numbers<[1], [0], [0], [1], [0, 0, 1, 1], [], []>} : vector<128x16xf32>, vector<16x64xf32>, vector<128x64xf32> -> vector<128x64xf32>
    %c0_102 = arith.constant 0 : index
    %c0_103 = arith.constant 0 : index
    %63 = vector.load %arg11[%c0_102, %c0_103] : memref<1x64xf32, #tpu.memory_space<vmem>>, vector<1x64xf32>
    %64 = vector.broadcast %63 : vector<1x64xf32> to vector<128x64xf32>
    %65 = arith.addf %62, %64 : vector<128x64xf32>
    %66 = vector.shape_cast %65 : vector<128x64xf32> to vector<2x64x64xf32>
    %c0_104 = arith.constant 0 : index
    %c0_105 = arith.constant 0 : index
    %c0_106 = arith.constant 0 : index
    %67 = vector.load %arg19[%c0_104, %c0_105, %c0_106] : memref<2x64x64xf32, #tpu.memory_space<vmem>>, vector<2x64x64xf32>
    tpu.vector_store %arg19[%c0_104, %c0_105, %c0_106], %66 {strides = array<i32>} : memref<2x64x64xf32, #tpu.memory_space<vmem>>, vector<2x64x64xf32>,
    %c0_107 = arith.constant 0 : index
    %c0_108 = arith.constant 0 : index
    %c0_109 = arith.constant 0 : index
    %68 = vector.load %arg19[%c0_107, %c0_108, %c0_109] : memref<2x64x64xf32, #tpu.memory_space<vmem>>, vector<2x64x64xf32>
    %cst_110 = arith.constant dense<0.000000e+00> : vector<2x64xf32>
    %69 = vector.multi_reduction <add>, %68, %cst_110 [1] : vector<2x64x64xf32> to vector<2x64xf32>
    %70 = arith.mulf %68, %68 : vector<2x64x64xf32>
    %cst_111 = arith.constant dense<0.000000e+00> : vector<2x64xf32>
    %71 = vector.multi_reduction <add>, %70, %cst_111 [1] : vector<2x64x64xf32> to vector<2x64xf32>
    %c0_112 = arith.constant 0 : index
    %c0_113 = arith.constant 0 : index
    %72 = vector.load %arg14[%c0_112, %c0_113] : memref<64x64xf32, #tpu.memory_space<vmem>>, vector<64x64xf32>
    %cst_114 = arith.constant dense<0.000000e+00> : vector<2x64xf32>
    %73 = tpu.matmul %69, %72, %cst_114 {dimension_numbers = #tpu.dot_dimension_numbers<[1], [0], [0], [1], [0, 0, 1, 1], [], []>} : vector<2x64xf32>, vector<64x64xf32>, vector<2x64xf32> -> vector<2x64xf32>
    %c0_115 = arith.constant 0 : index
    %c0_116 = arith.constant 0 : index
    %74 = vector.load %arg14[%c0_115, %c0_116] : memref<64x64xf32, #tpu.memory_space<vmem>>, vector<64x64xf32>
    %cst_117 = arith.constant dense<0.000000e+00> : vector<2x64xf32>
    %75 = tpu.matmul %71, %74, %cst_117 {dimension_numbers = #tpu.dot_dimension_numbers<[1], [0], [0], [1], [0, 0, 1, 1], [], []>} : vector<2x64xf32>, vector<64x64xf32>, vector<2x64xf32> -> vector<2x64xf32>
    %76 = arith.mulf %73, %73 : vector<2x64xf32>
    %77 = arith.subf %75, %76 : vector<2x64xf32>
    %cst_118 = arith.constant 9.99999974E-6 : f32
    %78 = vector.broadcast %cst_118 : f32 to vector<2x64xf32>
    %79 = arith.addf %77, %78 : vector<2x64xf32>
    %80 = math.rsqrt %79 : vector<2x64xf32>
    %c0_119 = arith.constant 0 : index
    %c0_120 = arith.constant 0 : index
    %81 = vector.load %arg3[%c0_119, %c0_120] : memref<2x32xf32, #tpu.memory_space<vmem>>, vector<2x32xf32>
    %c0_121 = arith.constant 0 : index
    %c0_122 = arith.constant 0 : index
    %82 = vector.load %arg15[%c0_121, %c0_122] : memref<32x16xf32, #tpu.memory_space<vmem>>, vector<32x16xf32>
    %cst_123 = arith.constant dense<0.000000e+00> : vector<2x16xf32>
    %83 = tpu.matmul %81, %82, %cst_123 {dimension_numbers = #tpu.dot_dimension_numbers<[1], [0], [0], [1], [0, 0, 1, 1], [], []>} : vector<2x32xf32>, vector<32x16xf32>, vector<2x16xf32> -> vector<2x16xf32>
    %c0_124 = arith.constant 0 : index
    %c0_125 = arith.constant 0 : index
    %84 = vector.load %arg16[%c0_124, %c0_125] : memref<1x16xf32, #tpu.memory_space<vmem>>, vector<1x16xf32>
    %85 = vector.broadcast %84 : vector<1x16xf32> to vector<2x16xf32>
    %86 = arith.addf %83, %85 : vector<2x16xf32>
    %cst_126 = arith.constant 0.000000e+00 : f32
    %87 = vector.broadcast %cst_126 : f32 to vector<2x16xf32>
    %88 = arith.maximumf %86, %87 : vector<2x16xf32>
    %c0_127 = arith.constant 0 : index
    %c0_128 = arith.constant 0 : index
    %89 = vector.load %arg4[%c0_127, %c0_128] : memref<2x32xf32, #tpu.memory_space<vmem>>, vector<2x32xf32>
    %c0_129 = arith.constant 0 : index
    %c0_130 = arith.constant 0 : index
    %90 = vector.load %arg17[%c0_129, %c0_130] : memref<32x16xf32, #tpu.memory_space<vmem>>, vector<32x16xf32>
    %cst_131 = arith.constant dense<0.000000e+00> : vector<2x16xf32>
    %91 = tpu.matmul %89, %90, %cst_131 {dimension_numbers = #tpu.dot_dimension_numbers<[1], [0], [0], [1], [0, 0, 1, 1], [], []>} : vector<2x32xf32>, vector<32x16xf32>, vector<2x16xf32> -> vector<2x16xf32>
    %c0_132 = arith.constant 0 : index
    %c0_133 = arith.constant 0 : index
    %92 = vector.load %arg18[%c0_132, %c0_133] : memref<1x16xf32, #tpu.memory_space<vmem>>, vector<1x16xf32>
    %93 = vector.broadcast %92 : vector<1x16xf32> to vector<2x16xf32>
    %94 = arith.addf %91, %93 : vector<2x16xf32>
    %cst_134 = arith.constant 0.000000e+00 : f32
    %95 = vector.broadcast %cst_134 : f32 to vector<2x16xf32>
    %96 = arith.maximumf %94, %95 : vector<2x16xf32>
    %97 = arith.addf %88, %96 : vector<2x16xf32>
    %98 = tpu.concatenate %97, %97, %97, %97 in 1 : vector<2x16xf32>, vector<2x16xf32>, vector<2x16xf32>, vector<2x16xf32> -> vector<2x64xf32>
    %c0_135 = arith.constant 0 : index
    %c0_136 = arith.constant 0 : index
    %99 = vector.load %arg12[%c0_135, %c0_136] : memref<1x64xf32, #tpu.memory_space<vmem>>, vector<1x64xf32>
    %100 = vector.broadcast %99 : vector<1x64xf32> to vector<2x64xf32>
    %101 = arith.mulf %80, %100 : vector<2x64xf32>
    %c0_137 = arith.constant 0 : index
    %c0_138 = arith.constant 0 : index
    %102 = vector.load %arg13[%c0_137, %c0_138] : memref<1x64xf32, #tpu.memory_space<vmem>>, vector<1x64xf32>
    %103 = arith.mulf %73, %101 : vector<2x64xf32>
    %104 = vector.broadcast %102 : vector<1x64xf32> to vector<2x64xf32>
    %105 = arith.subf %104, %103 : vector<2x64xf32>
    %106 = arith.addf %105, %98 : vector<2x64xf32>
    %c0_139 = arith.constant 0 : index
    %c0_140 = arith.constant 0 : index
    %c0_141 = arith.constant 0 : index
    %107 = vector.load %arg19[%c0_139, %c0_140, %c0_141] : memref<2x64x64xf32, #tpu.memory_space<vmem>>, vector<2x64x64xf32>
    %108 = vector.shape_cast %101 : vector<2x64xf32> to vector<2x1x64xf32>
    %109 = vector.broadcast %108 : vector<2x1x64xf32> to vector<2x64x64xf32>
    %110 = arith.mulf %107, %109 : vector<2x64x64xf32>
    %111 = vector.shape_cast %106 : vector<2x64xf32> to vector<2x1x64xf32>
    %112 = vector.broadcast %111 : vector<2x1x64xf32> to vector<2x64x64xf32>
    %113 = arith.addf %110, %112 : vector<2x64x64xf32>
    %c0_142 = arith.constant 0 : index
    %c0_143 = arith.constant 0 : index
    %c0_144 = arith.constant 0 : index
    %114 = vector.load %arg19[%c0_142, %c0_143, %c0_144] : memref<2x64x64xf32, #tpu.memory_space<vmem>>, vector<2x64x64xf32>
    tpu.vector_store %arg19[%c0_142, %c0_143, %c0_144], %113 {strides = array<i32>} : memref<2x64x64xf32, #tpu.memory_space<vmem>>, vector<2x64x64xf32>,
    return
  }
  func.func @transform_0(%arg0: i32) -> (i32, i32, i32, i32) {
    %c0_i32 = arith.constant 0 : i32
    %c0_i32_0 = arith.constant 0 : i32
    %c0_i32_1 = arith.constant 0 : i32
    %c0_i32_2 = arith.constant 0 : i32
    return %arg0, %c0_i32, %c0_i32_0, %c0_i32_1 : i32, i32, i32, i32
  }
  func.func @transform_1(%arg0: i32) -> (i32, i32, i32) {
    %c0_i32 = arith.constant 0 : i32
    %c0_i32_0 = arith.constant 0 : i32
    %c0_i32_1 = arith.constant 0 : i32
    return %arg0, %c0_i32, %c0_i32_0 : i32, i32, i32
  }
  func.func @transform_2(%arg0: i32) -> (i32, i32) {
    %c0_i32 = arith.constant 0 : i32
    %c0_i32_0 = arith.constant 0 : i32
    return %arg0, %c0_i32 : i32, i32
  }
  func.func @transform_3(%arg0: i32) -> (i32, i32) {
    %c0_i32 = arith.constant 0 : i32
    %c0_i32_0 = arith.constant 0 : i32
    return %arg0, %c0_i32 : i32, i32
  }
  func.func @transform_4(%arg0: i32) -> (i32, i32) {
    %c0_i32 = arith.constant 0 : i32
    %c0_i32_0 = arith.constant 0 : i32
    %c0_i32_1 = arith.constant 0 : i32
    return %c0_i32, %c0_i32_0 : i32, i32
  }
  func.func @transform_5(%arg0: i32) -> (i32, i32) {
    %c0_i32 = arith.constant 0 : i32
    %c0_i32_0 = arith.constant 0 : i32
    %c0_i32_1 = arith.constant 0 : i32
    return %c0_i32, %c0_i32_0 : i32, i32
  }
  func.func @transform_6(%arg0: i32) -> (i32, i32) {
    %c0_i32 = arith.constant 0 : i32
    %c0_i32_0 = arith.constant 0 : i32
    %c0_i32_1 = arith.constant 0 : i32
    return %c0_i32, %c0_i32_0 : i32, i32
  }
  func.func @transform_7(%arg0: i32) -> (i32, i32) {
    %c0_i32 = arith.constant 0 : i32
    %c0_i32_0 = arith.constant 0 : i32
    %c0_i32_1 = arith.constant 0 : i32
    return %c0_i32, %c0_i32_0 : i32, i32
  }
  func.func @transform_8(%arg0: i32) -> (i32, i32) {
    %c0_i32 = arith.constant 0 : i32
    %c0_i32_0 = arith.constant 0 : i32
    %c0_i32_1 = arith.constant 0 : i32
    return %c0_i32, %c0_i32_0 : i32, i32
  }
  func.func @transform_9(%arg0: i32) -> (i32, i32) {
    %c0_i32 = arith.constant 0 : i32
    %c0_i32_0 = arith.constant 0 : i32
    %c0_i32_1 = arith.constant 0 : i32
    return %c0_i32, %c0_i32_0 : i32, i32
  }
  func.func @transform_10(%arg0: i32) -> (i32, i32) {
    %c0_i32 = arith.constant 0 : i32
    %c0_i32_0 = arith.constant 0 : i32
    %c0_i32_1 = arith.constant 0 : i32
    return %c0_i32, %c0_i32_0 : i32, i32
  }
  func.func @transform_11(%arg0: i32) -> (i32, i32) {
    %c0_i32 = arith.constant 0 : i32
    %c0_i32_0 = arith.constant 0 : i32
    %c0_i32_1 = arith.constant 0 : i32
    return %c0_i32, %c0_i32_0 : i32, i32
  }
  func.func @transform_12(%arg0: i32) -> (i32, i32) {
    %c0_i32 = arith.constant 0 : i32
    %c0_i32_0 = arith.constant 0 : i32
    %c0_i32_1 = arith.constant 0 : i32
    return %c0_i32, %c0_i32_0 : i32, i32
  }
  func.func @transform_13(%arg0: i32) -> (i32, i32) {
    %c0_i32 = arith.constant 0 : i32
    %c0_i32_0 = arith.constant 0 : i32
    %c0_i32_1 = arith.constant 0 : i32
    return %c0_i32, %c0_i32_0 : i32, i32
  }
  func.func @transform_14(%arg0: i32) -> (i32, i32) {
    %c0_i32 = arith.constant 0 : i32
    %c0_i32_0 = arith.constant 0 : i32
    %c0_i32_1 = arith.constant 0 : i32
    return %c0_i32, %c0_i32_0 : i32, i32
  }
  func.func @transform_15(%arg0: i32) -> (i32, i32) {
    %c0_i32 = arith.constant 0 : i32
    %c0_i32_0 = arith.constant 0 : i32
    %c0_i32_1 = arith.constant 0 : i32
    return %c0_i32, %c0_i32_0 : i32, i32
  }
  func.func @transform_16(%arg0: i32) -> (i32, i32) {
    %c0_i32 = arith.constant 0 : i32
    %c0_i32_0 = arith.constant 0 : i32
    %c0_i32_1 = arith.constant 0 : i32
    return %c0_i32, %c0_i32_0 : i32, i32
  }
  func.func @transform_17(%arg0: i32) -> (i32, i32) {
    %c0_i32 = arith.constant 0 : i32
    %c0_i32_0 = arith.constant 0 : i32
    %c0_i32_1 = arith.constant 0 : i32
    return %c0_i32, %c0_i32_0 : i32, i32
  }
  func.func @transform_18(%arg0: i32) -> (i32, i32, i32) {
    %c0_i32 = arith.constant 0 : i32
    %c0_i32_0 = arith.constant 0 : i32
    %c0_i32_1 = arith.constant 0 : i32
    return %arg0, %c0_i32, %c0_i32_0 : i32, i32, i32
  }
}

</mosaic_0001>

<bundles_post_ra>
// kernel: tile.18
= control target key start
LH: loop header
LB: loop body
LE: loop exit
PB: predicated region body
PF: predicated region fallthrough
CT: control target
= control target key end

     0   :  { %s22_s0 = inlined_call_operand.vmem [shape: f32[16], index: 0, kind: input, shape index: {}]   ;;  %s23_s1 = inlined_call_operand.vmem [shape: f32[4,16], index: 1, kind: output, shape index: {}]  }
   0x1   :  { %v4_v0 = vld [vmem:[%s22_s0] ss:$0 sm:$0xff] }
   0x2   :  { %5 = vst [vmem:[%s23_s1] sm:$0xf] %v4_v0 }

// kernel: tile.19
= control target key start
LH: loop header
LB: loop body
LE: loop exit
PB: predicated region body
PF: predicated region fallthrough
CT: control target
= control target key end

     0   :  { %vm7_vm0 = vcmask 130048   ;;  %s37_s8 = smov 16   ;;  %s38_s9 = smov 32   ;;  %vm13_vm1 = vcmask 523648   ;;  %vm19_vm2 = vcmask 392448   ;;  %vm25_vm3 = vcmask 261248   ;;  %s55_s0 = inlined_call_operand.vmem [shape: f32[4,16], index: 0, kind: input, shape index: {}]   ;;  %s56_s1 = inlined_call_operand.vmem [shape: f32[1,64], index: 1, kind: output, shape index: {}]  }
   0x1   :  { %v4_v0 = vld [vmem:[%s55_s0] sm:$0xf]  ;;  %s36_s0 = smov 48  }
   0x2   :  { %5 = vst [vmem:[#allocation1] sm:$0xf] %v4_v0 }
   0x9   :  { %v10_v1 = vld [vmem:[#allocation1 + $0x3] sm:$0x1]   ;;  %v22_v2 = vld [vmem:[#allocation1 + $0x1] sm:$0x1]   ;;  %v6_v3 = vld [vmem:[#allocation1] sm:$0x1]  }
   0xa   :  { %11 = vrot.lane.b32.xlu0 %v10_v1, %s36_s0  ;;  %23 = vrot.lane.b32.xlu1 %v22_v2, %s37_s8  ;;  %v16_v4 = vld [vmem:[#allocation1 + $0x2] sm:$0x1]   ;;  %8 = vst.msk [vmem:[#allocation0] sm:$0x1] %vm7_vm0, %v6_v3  }
   0xe   :  { %17 = vrot.lane.b32.xlu0 %v16_v4, %s38_s9 }
  0x7c   :  { %v12_v5 = vpop.permute.xlu0 %11   ;;  %v24_v6 = vpop.permute.xlu1 %23  }
  0x7d   :  { %14 = vst.msk [vmem:[#allocation0] sm:$0x1] %vm13_vm1, %v12_v5  }
  0x80   :  { %v18_v7 = vpop.permute.xlu0 %17  }
  0x81   :  { %20 = vst.msk [vmem:[#allocation0] sm:$0x1] %vm19_vm2, %v18_v7  }
  0x82   :  { %26 = vst.msk [vmem:[#allocation0] sm:$0x1] %vm25_vm3, %v24_v6  }
  0x89   :  { %v30_v8 = vld [vmem:[#allocation0] sm:$0x1] }
  0x8a   :  { %32 = vst [vmem:[%s56_s1] sm:$0x1] %v30_v8 }

// kernel: mask_up_conv.1
= control target key start
LH: loop header
LB: loop body
LE: loop exit
PB: predicated region body
PF: predicated region fallthrough
CT: control target
= control target key end

     0   :  { %vm59_vm0 = vcmask 130048   ;;  %vm61_vm1 = vcmask 123904   ;;  %v2686_v0 = vmov 0.0   ;;  %v2687_v4 = vmov 0.0|0.0   ;;  %s2690_s23 = smov 32   ;;  %s2691_s24 = smov 64   ;;  %s4156_s0 = inlined_call_operand.vmem [shape: f32[2,8,8,16], index: 0, kind: input, shape index: {}]   ;;  %s4157_s4 = inlined_call_operand.vmem [shape: f32[144,16], index: 4, kind: input, shape index: {}]   ;;  %s4158_s8 = inlined_call_operand.vmem [shape: f32[16,16], index: 8, kind: input, shape index: {}]   ;;  %s4159_s5 = inlined_call_operand.vmem [shape: f32[1,16], index: 5, kind: input, shape index: {}]   ;;  %s4160_s9 = inlined_call_operand.vmem [shape: f32[16,64], index: 9, kind: input, shape index: {}]   ;;  %s4161_s6 = inlined_call_operand.vmem [shape: f32[1,16], index: 6, kind: input, shape index: {}]   ;;  %s4162_s7 = inlined_call_operand.vmem [shape: f32[1,16], index: 7, kind: input, shape index: {}]   ;;  %s4163_s1 = inlined_call_operand.vmem [shape: f32[2,64,16], index: 1, kind: input, shape index: {}]   ;;  %s4164_s13 = inlined_call_operand.vmem [shape: f32[64,64], index: 13, kind: input, shape index: {}]   ;;  %s4165_s10 = inlined_call_operand.vmem [shape: f32[1,64], index: 10, kind: input, shape index: {}]   ;;  %s4166_s18 = inlined_call_operand.vmem [shape: f32[2,64,64], index: 18, kind: output, shape index: {}]   ;;  %s4167_s14 = inlined_call_operand.vmem [shape: f32[32,16], index: 14, kind: input, shape index: {}]   ;;  %s4168_s16 = inlined_call_operand.vmem [shape: f32[32,16], index: 16, kind: input, shape index: {}]   ;;  %s4169_s2 = inlined_call_operand.vmem [shape: f32[2,32], index: 2, kind: input, shape index: {}]   ;;  %s4170_s3 = inlined_call_operand.vmem [shape: f32[2,32], index: 3, kind: input, shape index: {}]   ;;  %s4171_s15 = inlined_call_operand.vmem [shape: f32[1,16], index: 15, kind: input, shape index: {}]   ;;  %s4172_s11 = inlined_call_operand.vmem [shape: f32[1,64], index: 11, kind: input, shape index: {}]   ;;  %s4173_s17 = inlined_call_operand.vmem [shape: f32[1,16], index: 17, kind: input, shape index: {}]   ;;  %s4174_s12 = inlined_call_operand.vmem [shape: f32[1,64], index: 12, kind: input, shape index: {}]  }
   0x1   :  { %4178 = sst [smem:[#allocation4_spill]] %s4156_s0  ;;  %60 = vst.msk [vmem:[#allocation2] sm:$0xff] %vm59_vm0, %v2686_v0  ;;  %63 = vst.msk [vmem:[#allocation2 + $0x10] sm:$0xff] %vm59_vm0, %v2686_v0  ;;  %2598 = vmatprep.subr.bf16.mxu0 %v2687_v4  ;;  %2625 = vmatprep.subr.bf16.mxu1 %v2687_v4  ;;  %s2688_s0 = smov 16   ;;  %vm246_vm2 = vcmask 261248   ;;  %vm343_vm3 = vcmask 392448  }
   0x2   :  { %4179 = sst [smem:[#allocation5_spill]] %s4157_s4  ;;  %62 = vst.msk [vmem:[#allocation2 + $0x8] sm:$0x3] %vm61_vm1, %v2686_v0  ;;  %64 = vst.msk [vmem:[#allocation2 + $0x18] sm:$0x3] %vm61_vm1, %v2686_v0  ;;  %s4181_s29 = sld [smem:[#allocation4_spill]] }
   0x3   :  { %4180 = sst [smem:[#allocation6_spill]] %s4158_s8  ;;  %65 = vst.msk [vmem:[#allocation2 + $0x20] sm:$0xff] %vm59_vm0, %v2686_v0  ;;  %67 = vst.msk [vmem:[#allocation2 + $0x30] sm:$0xff] %vm59_vm0, %v2686_v0  ;;  %s4182_s19 = sld [smem:[#allocation5_spill]]  ;;  %vm440_vm4 = vcmask 523648   ;;  %vm537_vm5 = vcmask 654848  }
   0x4   :  { %66 = vst.msk [vmem:[#allocation2 + $0x28] sm:$0x3] %vm61_vm1, %v2686_v0  ;;  %68 = vst.msk [vmem:[#allocation2 + $0x38] sm:$0x3] %vm61_vm1, %v2686_v0  ;;  %s2689_s4 = smov 48   ;;  %s2692_s30 = smov 80  }
   0x5   :  { %69 = vst.msk [vmem:[#allocation2 + $0x40] sm:$0xff] %vm59_vm0, %v2686_v0  ;;  %71 = vst.msk [vmem:[#allocation2 + $0x50] sm:$0xff] %vm59_vm0, %v2686_v0  ;;  %s2693_s27 = smov 96   ;;  %s2694_s20 = smov 112   ;;  %vm634_vm6 = vcmask 786048   ;;  %vm732_vm7 = vcmask 917248  }
   0x6   :  { %70 = vst.msk [vmem:[#allocation2 + $0x48] sm:$0x3] %vm61_vm1, %v2686_v0  ;;  %72 = vst.msk [vmem:[#allocation2 + $0x58] sm:$0x3] %vm61_vm1, %v2686_v0  ;;  %vm829_vm8 = vcmask 1048448   ;;  %vm2695_vm9 = vmmov 0  }
   0x7   :  { %73 = vst.msk [vmem:[#allocation2 + $0x60] sm:$0xff] %vm59_vm0, %v2686_v0  ;;  %75 = vst.msk [vmem:[#allocation2 + $0x70] sm:$0xff] %vm59_vm0, %v2686_v0  ;;  %2500 = vmatprep.mubr.msk.f32.mxu1 %vm2695_vm9, %v2686_v0  ;;  %vm1232_vm10 = vcmask 1041409   ;;  %vm1779_vm11 = vcmask 523264   ;;  %vm2086_vm12 = vcmask 261120   ;;  %vm2260_vm13 = vcmask 392192  }
   0x8   :  { %74 = vst.msk [vmem:[#allocation2 + $0x68] sm:$0x3] %vm61_vm1, %v2686_v0  ;;  %76 = vst.msk [vmem:[#allocation2 + $0x78] sm:$0x3] %vm61_vm1, %v2686_v0  ;;  %v101_v1 = vld [vmem:[%s4181_s29] sm:$0xff]  ;;  %v102_v2 = vld [vmem:[%s4181_s29 + $0x8] sm:$0xff] }
   0x9   :  { %77 = vst.msk [vmem:[#allocation2 + $0x80] sm:$0xff] %vm59_vm0, %v2686_v0  ;;  %79 = vst.msk [vmem:[#allocation2 + $0x90] sm:$0xff] %vm59_vm0, %v2686_v0  ;;  %v103_v3 = vld [vmem:[%s4181_s29 + $0x10] sm:$0xff]  ;;  %v104_v5 = vld [vmem:[%s4181_s29 + $0x18] sm:$0xff] }
   0xa   :  { %78 = vst.msk [vmem:[#allocation2 + $0x88] sm:$0x3] %vm61_vm1, %v2686_v0  ;;  %80 = vst.msk [vmem:[#allocation2 + $0x98] sm:$0x3] %vm61_vm1, %v2686_v0  ;;  %v105_v6 = vld [vmem:[%s4181_s29 + $0x20] sm:$0xff]  ;;  %v106_v7 = vld [vmem:[%s4181_s29 + $0x28] sm:$0xff] }
   0xb   :  { %81 = vst.msk [vmem:[#allocation2 + $0xa0] sm:$0xff] %vm59_vm0, %v2686_v0  ;;  %83 = vst.msk [vmem:[#allocation2 + $0xb0] sm:$0xff] %vm59_vm0, %v2686_v0  ;;  %v107_v8 = vld [vmem:[%s4181_s29 + $0x30] sm:$0xff]  ;;  %v108_v9 = vld [vmem:[%s4181_s29 + $0x38] sm:$0xff] }
   0xc   :  { %82 = vst.msk [vmem:[#allocation2 + $0xa8] sm:$0x3] %vm61_vm1, %v2686_v0  ;;  %84 = vst.msk [vmem:[#allocation2 + $0xb8] sm:$0x3] %vm61_vm1, %v2686_v0  ;;  %v910_v10 = vld [vmem:[%s4182_s19] sm:$0xff]  ;;  %v911_v11 = vld [vmem:[%s4182_s19 + $0x8] sm:$0xff] }
   0xd   :  { %85 = vst.msk [vmem:[#allocation2 + $0xc0] sm:$0xff] %vm59_vm0, %v2686_v0  ;;  %87 = vst.msk [vmem:[#allocation2 + $0xd0] sm:$0xff] %vm59_vm0, %v2686_v0  ;;  %v912_v12 = vld [vmem:[%s4182_s19 + $0x10] sm:$0xff]  ;;  %v913_v13 = vld [vmem:[%s4182_s19 + $0x18] sm:$0xff]  ;;  %v2599_v14 = vpack.c.bf16 %v911_v11, %v910_v10 }
   0xe   :  { %86 = vst.msk [vmem:[#allocation2 + $0xc8] sm:$0x3] %vm61_vm1, %v2686_v0  ;;  %88 = vst.msk [vmem:[#allocation2 + $0xd8] sm:$0x3] %vm61_vm1, %v2686_v0  ;;  %v109_v15 = vld [vmem:[%s4181_s29 + $0x40] sm:$0xff]  ;;  %v2602_v16 = vpack.c.bf16 %v913_v13, %v912_v12  ;;  %v915_v19 = vld [vmem:[%s4182_s19 + $0x28] sm:$0xff] }
   0xf   :  { %89 = vst.msk [vmem:[#allocation2 + $0xe0] sm:$0xff] %vm59_vm0, %v2686_v0  ;;  %91 = vst.msk [vmem:[#allocation2 + $0xf0] sm:$0xff] %vm59_vm0, %v2686_v0  ;;  %2600 = vmatpush1.bf16.msra.mxu0 %v2599_v14  ;;  %v166_v17 = vld [vmem:[#allocation2 + $0x1] sm:$0xff]  ;;  %v916_v24 = vld [vmem:[%s4182_s19 + $0x30] sm:$0xff] }
  0x10   :  { %90 = vst.msk [vmem:[#allocation2 + $0xe8] sm:$0x3] %vm61_vm1, %v2686_v0  ;;  %92 = vst.msk [vmem:[#allocation2 + $0xf8] sm:$0x3] %vm61_vm1, %v2686_v0  ;;  %2601 = vmatprep.subr.bf16.mxu0 %v2687_v4  ;;  %v914_v18 = vld [vmem:[%s4182_s19 + $0x20] sm:$0xff]  ;;  %198 = vrot.lane.b32.xlu0 %v166_v17, %s2688_s0  ;;  %v917_v31 = vld [vmem:[%s4182_s19 + $0x38] sm:$0xff] }
  0x11   :  { %93 = vst.msk [vmem:[#allocation2 + $0x100] sm:$0xff] %vm59_vm0, %v2686_v0  ;;  %95 = vst.msk [vmem:[#allocation2 + $0x110] sm:$0xff] %vm59_vm0, %v2686_v0  ;;  %v263_v21 = vld [vmem:[#allocation2 + $0x2] sm:$0xff]  ;;  %v2605_v28 = vpack.c.bf16 %v915_v19, %v914_v18  ;;  %v2608_v39 = vpack.c.bf16 %v917_v31, %v916_v24  ;;  %v920_v47 = vld [vmem:[%s4182_s19 + $0x50] sm:$0xff] }
  0x12   :  { %94 = vst.msk [vmem:[#allocation2 + $0x108] sm:$0x3] %vm61_vm1, %v2686_v0  ;;  %96 = vst.msk [vmem:[#allocation2 + $0x118] sm:$0x3] %vm61_vm1, %v2686_v0  ;;  %v918_v41 = vld [vmem:[%s4182_s19 + $0x40] sm:$0xff]  ;;  %v919_v42 = vld [vmem:[%s4182_s19 + $0x48] sm:$0xff] }
  0x13   :  { %97 = vst.msk [vmem:[#allocation2 + $0x120] sm:$0xff] %vm59_vm0, %v2686_v0  ;;  %99 = vst.msk [vmem:[#allocation2 + $0x130] sm:$0xff] %vm59_vm0, %v2686_v0  ;;  %2603 = vmatpush1.bf16.msra.mxu0 %v2602_v16  ;;  %v134_v44 = vld [vmem:[#allocation2] sm:$0xff]  ;;  %v2611_v45 = vpack.c.bf16 %v919_v42, %v918_v41  ;;  %v110_v46 = vld [vmem:[%s4181_s29 + $0x48] sm:$0xff] }
  0x14   :  { %98 = vst.msk [vmem:[#allocation2 + $0x128] sm:$0x3] %vm61_vm1, %v2686_v0  ;;  %100 = vst.msk [vmem:[#allocation2 + $0x138] sm:$0x3] %vm61_vm1, %v2686_v0  ;;  %2604 = vmatprep.subr.bf16.mxu0 %v2687_v4  ;;  %295 = vrot.lane.b32.xlu0 %v263_v21, %s2690_s23  ;;  %v921_v48 = vld [vmem:[%s4182_s19 + $0x58] sm:$0xff]  ;;  %v111_v50 = vld [vmem:[%s4181_s29 + $0x50] sm:$0xff] }
  0x15   :  { %118 = vst.msk [vmem:[#allocation2 + $0x11] sm:$0xff] %vm59_vm0, %v101_v1  ;;  %119 = vst.msk [vmem:[#allocation2 + $0x21] sm:$0xff] %vm59_vm0, %v102_v2  ;;  %v2614_v52 = vpack.c.bf16 %v921_v48, %v920_v47  ;;  %v922_v53 = vld [vmem:[%s4182_s19 + $0x60] sm:$0xff]  ;;  %v923_v54 = vld [vmem:[%s4182_s19 + $0x68] sm:$0xff] }
  0x16   :  { %120 = vst.msk [vmem:[#allocation2 + $0x31] sm:$0xff] %vm59_vm0, %v103_v3  ;;  %121 = vst.msk [vmem:[#allocation2 + $0x41] sm:$0xff] %vm59_vm0, %v104_v5  ;;  %v112_v55 = vld [vmem:[%s4181_s29 + $0x58] sm:$0xff]  ;;  %v2617_v57 = vpack.c.bf16 %v923_v54, %v922_v53  ;;  %v924_v59 = vld [vmem:[%s4182_s19 + $0x70] sm:$0xff] }
  0x17   :  { %122 = vst.msk [vmem:[#allocation2 + $0x51] sm:$0xff] %vm59_vm0, %v105_v6  ;;  %123 = vst.msk [vmem:[#allocation2 + $0x61] sm:$0xff] %vm59_vm0, %v106_v7  ;;  %2606 = vmatpush1.bf16.msra.mxu0 %v2605_v28  ;;  %v925_v60 = vld [vmem:[%s4182_s19 + $0x78] sm:$0xff]  ;;  %v926_v1 = vld [vmem:[%s4182_s19 + $0x80] sm:$0xff] }
  0x18   :  { %124 = vst.msk [vmem:[#allocation2 + $0x71] sm:$0xff] %vm59_vm0, %v107_v8  ;;  %125 = vst.msk [vmem:[#allocation2 + $0x81] sm:$0xff] %vm59_vm0, %v108_v9  ;;  %2607 = vmatprep.subr.bf16.mxu0 %v2687_v4  ;;  %v2620_v63 = vpack.c.bf16 %v925_v60, %v924_v59  ;;  %v927_v2 = vld [vmem:[%s4182_s19 + $0x88] sm:$0xff]  ;;  %v113_v7 = vld [vmem:[%s4181_s29 + $0x60] sm:$0xff] }
  0x19   :  { %126 = vst.msk [vmem:[#allocation2 + $0xb1] sm:$0xff] %vm59_vm0, %v109_v15  ;;  %150 = vst.msk [vmem:[#allocation3] sm:$0xff] %vm59_vm0, %v134_v44  ;;  %v2623_v5 = vpack.c.bf16 %v927_v2, %v926_v1  ;;  %v114_v11 = vld [vmem:[%s4181_s29 + $0x68] sm:$0xff]  ;;  %v115_v15 = vld [vmem:[%s4181_s29 + $0x70] sm:$0xff] }
  0x1a   :  { %127 = vst.msk [vmem:[#allocation2 + $0xc1] sm:$0xff] %vm59_vm0, %v110_v46  ;;  %128 = vst.msk [vmem:[#allocation2 + $0xd1] sm:$0xff] %vm59_vm0, %v111_v50  ;;  %v116_v19 = vld [vmem:[%s4181_s29 + $0x78] sm:$0xff]  ;;  %v271_v28 = vld [vmem:[#allocation2 + $0xa2] sm:$0xff] }
  0x1b   :  { %2609 = vmatpush1.bf16.msra.mxu0 %v2608_v39  ;;  %129 = vst.msk [vmem:[#allocation2 + $0xe1] sm:$0xff] %vm59_vm0, %v112_v55  ;;  %130 = vst.msk [vmem:[#allocation2 + $0xf1] sm:$0xff] %vm59_vm0, %v113_v7 }
  0x1c   :  { %v360_v20 = vld [vmem:[#allocation2 + $0x10] sm:$0xff]  ;;  %v2931_v22 = vld [vmem:[#allocation2 + $0x20] sm:$0xff]  ;;  %2610 = vmatprep.subr.bf16.mxu0 %v2687_v4  ;;  %131 = vst.msk [vmem:[#allocation2 + $0x101] sm:$0xff] %vm59_vm0, %v114_v11  ;;  %132 = vst.msk [vmem:[#allocation2 + $0x111] sm:$0xff] %vm59_vm0, %v115_v15 }
  0x1d   :  { %392 = vrot.lane.b32.xlu1 %v360_v20, %s2689_s4  ;;  %v2933_v23 = vld [vmem:[#allocation2 + $0x22] sm:$0xff]  ;;  %151 = vst.msk [vmem:[#allocation3 + $0x10] sm:$0xff] %vm59_vm0, %v360_v20  ;;  %v457_v25 = vld [vmem:[#allocation2 + $0x11] sm:$0xff]  ;;  %152 = vst.msk [vmem:[#allocation3 + $0x20] sm:$0xff] %vm59_vm0, %v2931_v22 }
  0x1e   :  { %v2939_v26 = vld [vmem:[#allocation2 + $0x30] sm:$0xff]  ;;  %862 = vst.msk [vmem:[#allocation3 + $0x8] sm:$0xff] %vm59_vm0, %v2933_v23  ;;  %v2947_v29 = vld [vmem:[#allocation2 + $0x40] sm:$0xff]  ;;  %200 = vrot.lane.b32.xlu0 %v457_v25, %s2688_s0  ;;  %133 = vst.msk [vmem:[#allocation2 + $0x121] sm:$0xff] %vm59_vm0, %v116_v19 }
  0x1f   :  { %v2941_v27 = vld [vmem:[#allocation2 + $0x32] sm:$0xff]  ;;  %v2949_v30 = vld [vmem:[#allocation2 + $0x42] sm:$0xff]  ;;  %153 = vst.msk [vmem:[#allocation3 + $0x30] sm:$0xff] %vm59_vm0, %v2939_v26  ;;  %154 = vst.msk [vmem:[#allocation3 + $0x40] sm:$0xff] %vm59_vm0, %v2947_v29  ;;  %2612 = vmatpush1.bf16.msra.mxu0 %v2611_v45 }
  0x20   :  { %863 = vst.msk [vmem:[#allocation3 + $0x18] sm:$0xff] %vm59_vm0, %v2941_v27  ;;  %v2960_v32 = vld [vmem:[#allocation2 + $0x50] sm:$0xff]  ;;  %864 = vst.msk [vmem:[#allocation3 + $0x28] sm:$0xff] %vm59_vm0, %v2949_v30  ;;  %v2969_v34 = vld [vmem:[#allocation2 + $0x60] sm:$0xff]  ;;  %2613 = vmatprep.subr.bf16.mxu0 %v2687_v4 }
  0x21   :  { %v2962_v33 = vld [vmem:[#allocation2 + $0x52] sm:$0xff]  ;;  %489 = vrot.lane.b32.xlu1 %v457_v25, %s2691_s24  ;;  %v2971_v35 = vld [vmem:[#allocation2 + $0x62] sm:$0xff]  ;;  %155 = vst.msk [vmem:[#allocation3 + $0x50] sm:$0xff] %vm59_vm0, %v2960_v32  ;;  %156 = vst.msk [vmem:[#allocation3 + $0x60] sm:$0xff] %vm59_vm0, %v2969_v34 }
  0x22   :  { %865 = vst.msk [vmem:[#allocation3 + $0x38] sm:$0xff] %vm59_vm0, %v2962_v33  ;;  %v554_v36 = vld [vmem:[#allocation2 + $0x12] sm:$0xff]  ;;  %866 = vst.msk [vmem:[#allocation3 + $0x48] sm:$0xff] %vm59_vm0, %v2971_v35  ;;  %v2985_v40 = vld [vmem:[#allocation2 + $0x82] sm:$0xff] }
  0x23   :  { %v2977_v37 = vld [vmem:[#allocation2 + $0x70] sm:$0xff]  ;;  %868 = vst.msk [vmem:[#allocation3 + $0x68] sm:$0xff] %vm59_vm0, %v2985_v40  ;;  %297 = vrot.lane.b32.xlu0 %v554_v36, %s2690_s23  ;;  %v749_v51 = vld [vmem:[#allocation2 + $0x21] sm:$0xff]  ;;  %2615 = vmatpush1.bf16.msra.mxu0 %v2614_v52 }
  0x24   :  { %v2979_v38 = vld [vmem:[#allocation2 + $0x72] sm:$0xff]  ;;  %157 = vst.msk [vmem:[#allocation3 + $0x70] sm:$0xff] %vm59_vm0, %v2977_v37  ;;  %v3040_v56 = vld [vmem:[#allocation2 + $0xc0] sm:$0xff]  ;;  %2616 = vmatprep.subr.bf16.mxu0 %v2687_v4 }
  0x25   :  { %867 = vst.msk [vmem:[#allocation3 + $0x58] sm:$0xff] %vm59_vm0, %v2979_v38  ;;  %v2999_v43 = vld [vmem:[#allocation2 + $0xb0] sm:$0xff]  ;;  %586 = vrot.lane.b32.xlu1 %v554_v36, %s2692_s30  ;;  %v879_v49 = vld [vmem:[#allocation3 + $0x8] sm:$0xff]  ;;  %160 = vst.msk [vmem:[#allocation3 + $0xa0] sm:$0xff] %vm59_vm0, %v3040_v56 }
  0x26   :  { %159 = vst.msk [vmem:[#allocation3 + $0x90] sm:$0xff] %vm59_vm0, %v2999_v43  ;;  %2399 = vmatprep.mubr.msk.f32.mxu0 %vm59_vm0, %v879_v49  ;;  %v3042_v58 = vld [vmem:[#allocation2 + $0xc2] sm:$0xff]  ;;  %v3057_v61 = vld [vmem:[#allocation2 + $0xd0] sm:$0xff] }
  0x27   :  { %394 = vrot.lane.b32.xlu0 %v2931_v22, %s2689_s4  ;;  %870 = vst.msk [vmem:[#allocation3 + $0x88] sm:$0xff] %vm59_vm0, %v3042_v58  ;;  %v3059_v62 = vld [vmem:[#allocation2 + $0xd2] sm:$0xff]  ;;  %2618 = vmatpush1.bf16.msra.mxu0 %v2617_v57  ;;  %161 = vst.msk [vmem:[#allocation3 + $0xb0] sm:$0xff] %vm59_vm0, %v3057_v61  ;;  %v3074_v3 = vld [vmem:[#allocation2 + $0xe0] sm:$0xff] }
  0x28   :  { %871 = vst.msk [vmem:[#allocation3 + $0x98] sm:$0xff] %vm59_vm0, %v3059_v62  ;;  %2619 = vmatprep.subr.bf16.mxu0 %v2687_v4  ;;  %162 = vst.msk [vmem:[#allocation3 + $0xc0] sm:$0xff] %vm59_vm0, %v3074_v3  ;;  %v750_v6 = vld [vmem:[#allocation2 + $0x31] sm:$0xff]  ;;  %v3091_v8 = vld [vmem:[#allocation2 + $0xe2] sm:$0xff] }
  0x29   :  { %684 = vrot.lane.b32.xlu1 %v2931_v22, %s2693_s27  ;;  %872 = vst.msk [vmem:[#allocation3 + $0xa8] sm:$0xff] %vm59_vm0, %v3091_v8  ;;  %v3098_v9 = vld [vmem:[#allocation2 + $0xf0] sm:$0xff]  ;;  %v751_v10 = vld [vmem:[#allocation2 + $0x41] sm:$0xff]  ;;  %v881_v47 = vld [vmem:[#allocation3 + $0x18] sm:$0xff] }
  0x2a   :  { %163 = vst.msk [vmem:[#allocation3 + $0xd0] sm:$0xff] %vm59_vm0, %v3098_v9  ;;  %v3114_v12 = vld [vmem:[#allocation2 + $0xf2] sm:$0xff]  ;;  %v3121_v13 = vld [vmem:[#allocation2 + $0x100] sm:$0xff]  ;;  %v883_v57 = vld [vmem:[#allocation3 + $0x28] sm:$0xff] }
  0x2b   :  { %491 = vrot.lane.b32.xlu0 %v749_v51, %s2691_s24  ;;  %2621 = vmatpush1.bf16.msra.mxu0 %v2620_v63  ;;  %873 = vst.msk [vmem:[#allocation3 + $0xb8] sm:$0xff] %vm59_vm0, %v3114_v12  ;;  %164 = vst.msk [vmem:[#allocation3 + $0xe0] sm:$0xff] %vm59_vm0, %v3121_v13  ;;  %v752_v14 = vld [vmem:[#allocation2 + $0x51] sm:$0xff]  ;;  %v3137_v16 = vld [vmem:[#allocation2 + $0x102] sm:$0xff] }
  0x2c   :  { %2622 = vmatprep.subr.bf16.mxu0 %v2687_v4  ;;  %874 = vst.msk [vmem:[#allocation3 + $0xc8] sm:$0xff] %vm59_vm0, %v3137_v16  ;;  %v3144_v17 = vld [vmem:[#allocation2 + $0x110] sm:$0xff]  ;;  %v753_v18 = vld [vmem:[#allocation2 + $0x61] sm:$0xff] }
  0x2d   :  { %781 = vrot.lane.b32.xlu1 %v749_v51, %s2694_s20  ;;  %165 = vst.msk [vmem:[#allocation3 + $0xf0] sm:$0xff] %vm59_vm0, %v3144_v17  ;;  %v3160_v20 = vld [vmem:[#allocation2 + $0x112] sm:$0xff]  ;;  %v3174_v22 = vld [vmem:[#allocation2 + $0x122] sm:$0xff] }
  0x2e   :  { %875 = vst.msk [vmem:[#allocation3 + $0xd8] sm:$0xff] %vm59_vm0, %v3160_v20  ;;  %v754_v21 = vld [vmem:[#allocation2 + $0x71] sm:$0xff]  ;;  %876 = vst.msk [vmem:[#allocation3 + $0xe8] sm:$0xff] %vm59_vm0, %v3174_v22  ;;  %v658_v24 = vld [vmem:[#allocation2 + $0x80] sm:$0xff] }
  0x2f   :  { %588 = vrot.lane.b32.xlu0 %v2933_v23, %s2692_s30  ;;  %2624 = vmatpush1.bf16.msra.mxu0 %v2623_v5  ;;  %v755_v25 = vld [vmem:[#allocation2 + $0x81] sm:$0xff]  ;;  %v758_v50 = vld [vmem:[#allocation2 + $0xd1] sm:$0xff] }
  0x30   :  { %v759_v60 = vld [vmem:[#allocation2 + $0xe1] sm:$0xff]  ;;  %v885_v5 = vld [vmem:[#allocation3 + $0x38] sm:$0xff] }
  0x31   :  { %202 = vrot.lane.b32.xlu1 %v749_v51, %s2688_s0  ;;  %v887_v19 = vld [vmem:[#allocation3 + $0x48] sm:$0xff] }
  0x33   :  { %686 = vrot.lane.b32.xlu0 %v2939_v26, %s2693_s27 }
  0x35   :  { %299 = vrot.lane.b32.xlu1 %v2933_v23, %s2690_s23  ;;  %v142_v23 = vld [vmem:[#allocation2 + $0xa0] sm:$0xff] }
  0x36   :  { %158 = vst.msk [vmem:[#allocation3 + $0x80] sm:$0xff] %vm59_vm0, %v142_v23 }
  0x37   :  { %783 = vrot.lane.b32.xlu0 %v750_v6, %s2694_s20 }
  0x39   :  { %396 = vrot.lane.b32.xlu1 %v2939_v26, %s2689_s4  ;;  %v853_v26 = vld [vmem:[#allocation2 + $0x92] sm:$0xff] }
  0x3a   :  { %869 = vst.msk [vmem:[#allocation3 + $0x78] sm:$0xff] %vm59_vm0, %v853_v26 }
  0x3b   :  { %204 = vrot.lane.b32.xlu0 %v750_v6, %s2688_s0 }
  0x3d   :  { %493 = vrot.lane.b32.xlu1 %v750_v6, %s2691_s24 }
  0x3f   :  { %301 = vrot.lane.b32.xlu0 %v2941_v27, %s2690_s23 }
  0x41   :  { %590 = vrot.lane.b32.xlu1 %v2941_v27, %s2692_s30  ;;  %v174_v27 = vld [vmem:[#allocation2 + $0xa1] sm:$0xff] }
  0x43   :  { %398 = vrot.lane.b32.xlu0 %v2947_v29, %s2689_s4 }
  0x45   :  { %688 = vrot.lane.b32.xlu1 %v2947_v29, %s2693_s27  ;;  %v659_v29 = vld [vmem:[#allocation2 + $0x90] sm:$0xff] }
  0x47   :  { %495 = vrot.lane.b32.xlu0 %v751_v10, %s2691_s24 }
  0x49   :  { %785 = vrot.lane.b32.xlu1 %v751_v10, %s2694_s20 }
  0x4b   :  { %592 = vrot.lane.b32.xlu0 %v2949_v30, %s2692_s30 }
  0x4d   :  { %206 = vrot.lane.b32.xlu1 %v751_v10, %s2688_s0  ;;  %v760_v10 = vld [vmem:[#allocation2 + $0xf1] sm:$0xff] }
  0x4f   :  { %690 = vrot.lane.b32.xlu0 %v2960_v32, %s2693_s27 }
  0x51   :  { %303 = vrot.lane.b32.xlu1 %v2949_v30, %s2690_s23  ;;  %v756_v30 = vld [vmem:[#allocation2 + $0x91] sm:$0xff] }
  0x53   :  { %787 = vrot.lane.b32.xlu0 %v752_v14, %s2694_s20 }
  0x55   :  { %400 = vrot.lane.b32.xlu1 %v2960_v32, %s2689_s4  ;;  %v465_v32 = vld [vmem:[#allocation2 + $0xb1] sm:$0xff] }
  0x57   :  { %208 = vrot.lane.b32.xlu0 %v752_v14, %s2688_s0 }
  0x59   :  { %497 = vrot.lane.b32.xlu1 %v752_v14, %s2691_s24 }
  0x5b   :  { %305 = vrot.lane.b32.xlu0 %v2962_v33, %s2690_s23 }
  0x5d   :  { %594 = vrot.lane.b32.xlu1 %v2962_v33, %s2692_s30 }
  0x5f   :  { %402 = vrot.lane.b32.xlu0 %v2969_v34, %s2689_s4 }
  0x61   :  { %692 = vrot.lane.b32.xlu1 %v2969_v34, %s2693_s27 }
  0x63   :  { %499 = vrot.lane.b32.xlu0 %v753_v18, %s2691_s24 }
  0x65   :  { %789 = vrot.lane.b32.xlu1 %v753_v18, %s2694_s20 }
  0x67   :  { %596 = vrot.lane.b32.xlu0 %v2971_v35, %s2692_s30 }
  0x69   :  { %210 = vrot.lane.b32.xlu1 %v753_v18, %s2688_s0 }
  0x6b   :  { %694 = vrot.lane.b32.xlu0 %v2977_v37, %s2693_s27 }
  0x6d   :  { %307 = vrot.lane.b32.xlu1 %v2971_v35, %s2690_s23  ;;  %v562_v35 = vld [vmem:[#allocation2 + $0xb2] sm:$0xff] }
  0x6f   :  { %791 = vrot.lane.b32.xlu0 %v754_v21, %s2694_s20 }
  0x71   :  { %404 = vrot.lane.b32.xlu1 %v2977_v37, %s2689_s4 }
  0x73   :  { %212 = vrot.lane.b32.xlu0 %v754_v21, %s2688_s0 }
  0x75   :  { %501 = vrot.lane.b32.xlu1 %v754_v21, %s2691_s24 }
  0x77   :  { %309 = vrot.lane.b32.xlu0 %v2979_v38, %s2690_s23 }
  0x79   :  { %598 = vrot.lane.b32.xlu1 %v2979_v38, %s2692_s30 }
  0x7b   :  { %406 = vrot.lane.b32.xlu0 %v658_v24, %s2689_s4 }
  0x7d   :  { %696 = vrot.lane.b32.xlu1 %v658_v24, %s2693_s27  ;;  %v761_v24 = vld [vmem:[#allocation2 + $0x101] sm:$0xff] }
  0x7f   :  { %503 = vrot.lane.b32.xlu0 %v755_v25, %s2691_s24 }
  0x81   :  { %793 = vrot.lane.b32.xlu1 %v755_v25, %s2694_s20 }
  0x82   :  { %v199_v31 = vpop.permute.xlu0 %198 }
  0x83   :  { %600 = vrot.lane.b32.xlu0 %v2985_v40, %s2692_s30  ;;  %247 = vst.msk [vmem:[#allocation3] sm:$0xff] %vm246_vm2, %v199_v31  ;;  %v757_v40 = vld [vmem:[#allocation2 + $0xc1] sm:$0xff] }
  0x85   :  { %214 = vrot.lane.b32.xlu1 %v174_v27, %s2688_s0 }
  0x86   :  { %v296_v34 = vpop.permute.xlu0 %295 }
  0x87   :  { %698 = vrot.lane.b32.xlu0 %v659_v29, %s2693_s27  ;;  %344 = vst.msk [vmem:[#allocation3] sm:$0xff] %vm343_vm3, %v296_v34  ;;  %v889_v29 = vld [vmem:[#allocation3 + $0x58] sm:$0xff] }
  0x89   :  { %311 = vrot.lane.b32.xlu1 %v271_v28, %s2690_s23 }
  0x8b   :  { %795 = vrot.lane.b32.xlu0 %v756_v30, %s2694_s20 }
  0x8d   :  { %408 = vrot.lane.b32.xlu1 %v2999_v43, %s2689_s4 }
  0x8f   :  { %v393_v33 = vpop.permute.xlu1 %392  ;;  %216 = vrot.lane.b32.xlu0 %v465_v32, %s2688_s0 }
  0x90   :  { %441 = vst.msk [vmem:[#allocation3] sm:$0xff] %vm440_vm4, %v393_v33  ;;  %v201_v37 = vpop.permute.xlu0 %200 }
  0x91   :  { %505 = vrot.lane.b32.xlu1 %v465_v32, %s2691_s24  ;;  %248 = vst.msk [vmem:[#allocation3 + $0x10] sm:$0xff] %vm246_vm2, %v201_v37  ;;  %v762_v32 = vld [vmem:[#allocation2 + $0x111] sm:$0xff] }
  0x92   :  { %v861_v37 = vld [vmem:[#allocation2 + $0x132] sm:$0xff] }
  0x93   :  { %v490_v36 = vpop.permute.xlu1 %489  ;;  %313 = vrot.lane.b32.xlu0 %v562_v35, %s2690_s23  ;;  %877 = vst.msk [vmem:[#allocation3 + $0xf8] sm:$0xff] %vm59_vm0, %v861_v37 }
  0x94   :  { %538 = vst.msk [vmem:[#allocation3] sm:$0xff] %vm537_vm5, %v490_v36  ;;  %v666_v36 = vld [vmem:[#allocation2 + $0x120] sm:$0xff] }
  0x95   :  { %602 = vrot.lane.b32.xlu1 %v562_v35, %s2692_s30  ;;  %v298_v39 = vpop.permute.xlu0 %297 }
  0x96   :  { %345 = vst.msk [vmem:[#allocation3 + $0x10] sm:$0xff] %vm343_vm3, %v298_v39  ;;  %v891_v39 = vld [vmem:[#allocation3 + $0x68] sm:$0xff] }
  0x97   :  { %v587_v38 = vpop.permute.xlu1 %586  ;;  %410 = vrot.lane.b32.xlu0 %v3040_v56, %s2689_s4 }
  0x98   :  { %635 = vst.msk [vmem:[#allocation3] sm:$0xff] %vm634_vm6, %v587_v38 }
  0x99   :  { %700 = vrot.lane.b32.xlu1 %v3040_v56, %s2693_s27  ;;  %v395_v42 = vpop.permute.xlu0 %394 }
  0x9a   :  { %442 = vst.msk [vmem:[#allocation3 + $0x10] sm:$0xff] %vm440_vm4, %v395_v42  ;;  %v763_v42 = vld [vmem:[#allocation2 + $0x121] sm:$0xff] }
  0x9b   :  { %v685_v41 = vpop.permute.xlu1 %684  ;;  %507 = vrot.lane.b32.xlu0 %v757_v40, %s2691_s24 }
  0x9c   :  { %733 = vst.msk [vmem:[#allocation3] sm:$0xff] %vm732_vm7, %v685_v41 }
  0x9d   :  { %797 = vrot.lane.b32.xlu1 %v757_v40, %s2694_s20  ;;  %v492_v44 = vpop.permute.xlu0 %491 }
  0x9e   :  { %539 = vst.msk [vmem:[#allocation3 + $0x10] sm:$0xff] %vm537_vm5, %v492_v44 }
  0x9f   :  { %v782_v43 = vpop.permute.xlu1 %781  ;;  %604 = vrot.lane.b32.xlu0 %v3042_v58, %s2692_s30 }
  0xa0   :  { %830 = vst.msk [vmem:[#allocation3] sm:$0xff] %vm829_vm8, %v782_v43 }
  0xa1   :  { %218 = vrot.lane.b32.xlu1 %v757_v40, %s2688_s0  ;;  %v589_v46 = vpop.permute.xlu0 %588 }
  0xa2   :  { %636 = vst.msk [vmem:[#allocation3 + $0x10] sm:$0xff] %vm634_vm6, %v589_v46 }
  0xa3   :  { %v203_v45 = vpop.permute.xlu1 %202  ;;  %702 = vrot.lane.b32.xlu0 %v3057_v61, %s2693_s27 }
  0xa4   :  { %249 = vst.msk [vmem:[#allocation3 + $0x20] sm:$0xff] %vm246_vm2, %v203_v45  ;;  %v667_v45 = vld [vmem:[#allocation2 + $0x130] sm:$0xff] }
  0xa5   :  { %315 = vrot.lane.b32.xlu1 %v3042_v58, %s2690_s23  ;;  %v687_v51 = vpop.permute.xlu0 %686 }
  0xa6   :  { %734 = vst.msk [vmem:[#allocation3 + $0x10] sm:$0xff] %vm732_vm7, %v687_v51 }
  0xa7   :  { %v300_v48 = vpop.permute.xlu1 %299  ;;  %v878_v49 = vld [vmem:[#allocation3] sm:$0xff]  ;;  %799 = vrot.lane.b32.xlu0 %v758_v50, %s2694_s20 }
  0xa8   :  { %346 = vst.msk [vmem:[#allocation3 + $0x20] sm:$0xff] %vm343_vm3, %v300_v48  ;;  %1048 = vmatmul.mubr.f32.vlgmr.msra.gmra.mrb[0].mxu0 %v878_v49 }
  0xa9   :  { %412 = vrot.lane.b32.xlu1 %v3057_v61, %s2689_s4  ;;  %2400 = vmatprep.mubr.msk.f32.mxu0 %vm59_vm0, %v881_v47  ;;  %v784_v53 = vpop.permute.xlu0 %783  ;;  %v764_v47 = vld [vmem:[#allocation2 + $0x131] sm:$0xff] }
  0xaa   :  { %831 = vst.msk [vmem:[#allocation3 + $0x10] sm:$0xff] %vm829_vm8, %v784_v53 }
  0xab   :  { %v397_v52 = vpop.permute.xlu1 %396  ;;  %220 = vrot.lane.b32.xlu0 %v758_v50, %s2688_s0 }
  0xac   :  { %443 = vst.msk [vmem:[#allocation3 + $0x20] sm:$0xff] %vm440_vm4, %v397_v52 }
  0xad   :  { %509 = vrot.lane.b32.xlu1 %v758_v50, %s2691_s24  ;;  %v205_v55 = vpop.permute.xlu0 %204  ;;  %v893_v50 = vld [vmem:[#allocation3 + $0x78] sm:$0xff] }
  0xae   :  { %250 = vst.msk [vmem:[#allocation3 + $0x30] sm:$0xff] %vm246_vm2, %v205_v55 }
  0xaf   :  { %v494_v54 = vpop.permute.xlu1 %493  ;;  %317 = vrot.lane.b32.xlu0 %v3059_v62, %s2690_s23 }
  0xb0   :  { %540 = vst.msk [vmem:[#allocation3 + $0x20] sm:$0xff] %vm537_vm5, %v494_v54 }
  0xb1   :  { %606 = vrot.lane.b32.xlu1 %v3059_v62, %s2692_s30  ;;  %v302_v58 = vpop.permute.xlu0 %301  ;;  %v880_v59 = vld [vmem:[#allocation3 + $0x10] sm:$0xff] }
  0xb2   :  { %347 = vst.msk [vmem:[#allocation3 + $0x30] sm:$0xff] %vm343_vm3, %v302_v58  ;;  %1053 = vmatmul.mubr.f32.gmra.mrb[2].mxu0 %v880_v59  ;;  %v895_v58 = vld [vmem:[#allocation3 + $0x88] sm:$0xff] }
  0xb3   :  { %v591_v56 = vpop.permute.xlu1 %590  ;;  %414 = vrot.lane.b32.xlu0 %v3074_v3, %s2689_s4  ;;  %2401 = vmatprep.mubr.msk.f32.mxu0 %vm59_vm0, %v883_v57 }
  0xb4   :  { %637 = vst.msk [vmem:[#allocation3 + $0x20] sm:$0xff] %vm634_vm6, %v591_v56 }
  0xb5   :  { %704 = vrot.lane.b32.xlu1 %v3074_v3, %s2693_s27  ;;  %v399_v62 = vpop.permute.xlu0 %398 }
  0xb6   :  { %444 = vst.msk [vmem:[#allocation3 + $0x30] sm:$0xff] %vm440_vm4, %v399_v62 }
  0xb7   :  { %v689_v61 = vpop.permute.xlu1 %688  ;;  %511 = vrot.lane.b32.xlu0 %v759_v60, %s2691_s24 }
  0xb8   :  { %735 = vst.msk [vmem:[#allocation3 + $0x20] sm:$0xff] %vm732_vm7, %v689_v61 }
  0xb9   :  { %801 = vrot.lane.b32.xlu1 %v759_v60, %s2694_s20  ;;  %v496_v1 = vpop.permute.xlu0 %495 }
  0xba   :  { %541 = vst.msk [vmem:[#allocation3 + $0x30] sm:$0xff] %vm537_vm5, %v496_v1 }
  0xbb   :  { %v786_v63 = vpop.permute.xlu1 %785  ;;  %608 = vrot.lane.b32.xlu0 %v3091_v8, %s2692_s30 }
  0xbc   :  { %832 = vst.msk [vmem:[#allocation3 + $0x20] sm:$0xff] %vm829_vm8, %v786_v63 }
  0xbd   :  { %222 = vrot.lane.b32.xlu1 %v759_v60, %s2688_s0  ;;  %v593_v3 = vpop.permute.xlu0 %592 }
  0xbe   :  { %638 = vst.msk [vmem:[#allocation3 + $0x30] sm:$0xff] %vm634_vm6, %v593_v3 }
  0xbf   :  { %v207_v2 = vpop.permute.xlu1 %206  ;;  %706 = vrot.lane.b32.xlu0 %v3098_v9, %s2693_s27 }
  0xc0   :  { %251 = vst.msk [vmem:[#allocation3 + $0x40] sm:$0xff] %vm246_vm2, %v207_v2 }
  0xc1   :  { %319 = vrot.lane.b32.xlu1 %v3091_v8, %s2690_s23  ;;  %v691_v11 = vpop.permute.xlu0 %690 }
  0xc2   :  { %736 = vst.msk [vmem:[#allocation3 + $0x30] sm:$0xff] %vm732_vm7, %v691_v11 }
  0xc3   :  { %v304_v6 = vpop.permute.xlu1 %303  ;;  %v882_v7 = vld [vmem:[#allocation3 + $0x20] sm:$0xff]  ;;  %803 = vrot.lane.b32.xlu0 %v760_v10, %s2694_s20 }
  0xc4   :  { %348 = vst.msk [vmem:[#allocation3 + $0x40] sm:$0xff] %vm343_vm3, %v304_v6  ;;  %1058 = vmatmul.mubr.f32.gmra.mrb[4].mxu0 %v882_v7 }
  0xc5   :  { %416 = vrot.lane.b32.xlu1 %v3098_v9, %s2689_s4  ;;  %2402 = vmatprep.mubr.msk.f32.mxu0 %vm59_vm0, %v885_v5  ;;  %v788_v14 = vpop.permute.xlu0 %787  ;;  %v897_v5 = vld [vmem:[#allocation3 + $0x98] sm:$0xff] }
  0xc6   :  { %833 = vst.msk [vmem:[#allocation3 + $0x30] sm:$0xff] %vm829_vm8, %v788_v14 }
  0xc7   :  { %v401_v8 = vpop.permute.xlu1 %400  ;;  %224 = vrot.lane.b32.xlu0 %v760_v10, %s2688_s0 }
  0xc8   :  { %445 = vst.msk [vmem:[#allocation3 + $0x40] sm:$0xff] %vm440_vm4, %v401_v8 }
  0xc9   :  { %513 = vrot.lane.b32.xlu1 %v760_v10, %s2691_s24  ;;  %v209_v9 = vpop.permute.xlu0 %208 }
  0xca   :  { %252 = vst.msk [vmem:[#allocation3 + $0x50] sm:$0xff] %vm246_vm2, %v209_v9 }
  0xcb   :  { %v498_v15 = vpop.permute.xlu1 %497  ;;  %321 = vrot.lane.b32.xlu0 %v3114_v12, %s2690_s23 }
  0xcc   :  { %542 = vst.msk [vmem:[#allocation3 + $0x40] sm:$0xff] %vm537_vm5, %v498_v15 }
  0xcd   :  { %610 = vrot.lane.b32.xlu1 %v3114_v12, %s2692_s30  ;;  %v306_v21 = vpop.permute.xlu0 %305  ;;  %v884_v23 = vld [vmem:[#allocation3 + $0x30] sm:$0xff] }
  0xce   :  { %349 = vst.msk [vmem:[#allocation3 + $0x50] sm:$0xff] %vm343_vm3, %v306_v21  ;;  %1063 = vmatmul.mubr.f32.gmra.mrb[6].mxu0 %v884_v23 }
  0xcf   :  { %v595_v18 = vpop.permute.xlu1 %594  ;;  %418 = vrot.lane.b32.xlu0 %v3121_v13, %s2689_s4  ;;  %2403 = vmatprep.mubr.msk.f32.mxu0 %vm59_vm0, %v887_v19 }
  0xd0   :  { %639 = vst.msk [vmem:[#allocation3 + $0x40] sm:$0xff] %vm634_vm6, %v595_v18  ;;  %v899_v18 = vld [vmem:[#allocation3 + $0xa8] sm:$0xff] }
  0xd1   :  { %708 = vrot.lane.b32.xlu1 %v3121_v13, %s2693_s27  ;;  %v403_v12 = vpop.permute.xlu0 %402 }
  0xd2   :  { %446 = vst.msk [vmem:[#allocation3 + $0x50] sm:$0xff] %vm440_vm4, %v403_v12 }
  0xd3   :  { %v693_v25 = vpop.permute.xlu1 %692  ;;  %515 = vrot.lane.b32.xlu0 %v761_v24, %s2691_s24 }
  0xd4   :  { %737 = vst.msk [vmem:[#allocation3 + $0x40] sm:$0xff] %vm732_vm7, %v693_v25 }
  0xd5   :  { %805 = vrot.lane.b32.xlu1 %v761_v24, %s2694_s20  ;;  %v500_v27 = vpop.permute.xlu0 %499 }
  0xd6   :  { %543 = vst.msk [vmem:[#allocation3 + $0x50] sm:$0xff] %vm537_vm5, %v500_v27 }
  0xd7   :  { %v790_v26 = vpop.permute.xlu1 %789  ;;  %612 = vrot.lane.b32.xlu0 %v3137_v16, %s2692_s30 }
  0xd8   :  { %834 = vst.msk [vmem:[#allocation3 + $0x40] sm:$0xff] %vm829_vm8, %v790_v26 }
  0xd9   :  { %226 = vrot.lane.b32.xlu1 %v761_v24, %s2688_s0  ;;  %v597_v13 = vpop.permute.xlu0 %596 }
  0xda   :  { %640 = vst.msk [vmem:[#allocation3 + $0x50] sm:$0xff] %vm634_vm6, %v597_v13 }
  0xdb   :  { %v211_v28 = vpop.permute.xlu1 %210  ;;  %710 = vrot.lane.b32.xlu0 %v3144_v17, %s2693_s27 }
  0xdc   :  { %253 = vst.msk [vmem:[#allocation3 + $0x60] sm:$0xff] %vm246_vm2, %v211_v28  ;;  %v901_v28 = vld [vmem:[#allocation3 + $0xb8] sm:$0xff] }
  0xdd   :  { %323 = vrot.lane.b32.xlu1 %v3137_v16, %s2690_s23  ;;  %v695_v33 = vpop.permute.xlu0 %694 }
  0xde   :  { %738 = vst.msk [vmem:[#allocation3 + $0x50] sm:$0xff] %vm732_vm7, %v695_v33 }
  0xdf   :  { %v308_v30 = vpop.permute.xlu1 %307  ;;  %v886_v31 = vld [vmem:[#allocation3 + $0x40] sm:$0xff]  ;;  %807 = vrot.lane.b32.xlu0 %v762_v32, %s2694_s20 }
  0xe0   :  { %350 = vst.msk [vmem:[#allocation3 + $0x60] sm:$0xff] %vm343_vm3, %v308_v30  ;;  %1068 = vmatmul.mubr.f32.gmra.mrb[8].mxu0 %v886_v31 }
  0xe1   :  { %420 = vrot.lane.b32.xlu1 %v3144_v17, %s2689_s4  ;;  %2404 = vmatprep.mubr.msk.f32.mxu0 %vm59_vm0, %v889_v29  ;;  %v792_v34 = vpop.permute.xlu0 %791 }
  0xe2   :  { %835 = vst.msk [vmem:[#allocation3 + $0x50] sm:$0xff] %vm829_vm8, %v792_v34 }
  0xe3   :  { %v405_v16 = vpop.permute.xlu1 %404  ;;  %228 = vrot.lane.b32.xlu0 %v762_v32, %s2688_s0 }
  0xe4   :  { %447 = vst.msk [vmem:[#allocation3 + $0x60] sm:$0xff] %vm440_vm4, %v405_v16 }
  0xe5   :  { %517 = vrot.lane.b32.xlu1 %v762_v32, %s2691_s24  ;;  %v213_v17 = vpop.permute.xlu0 %212 }
  0xe6   :  { %254 = vst.msk [vmem:[#allocation3 + $0x70] sm:$0xff] %vm246_vm2, %v213_v17 }
  0xe7   :  { %v502_v35 = vpop.permute.xlu1 %501  ;;  %325 = vrot.lane.b32.xlu0 %v3160_v20, %s2690_s23 }
  0xe8   :  { %544 = vst.msk [vmem:[#allocation3 + $0x60] sm:$0xff] %vm537_vm5, %v502_v35  ;;  %v903_v35 = vld [vmem:[#allocation3 + $0xc8] sm:$0xff] }
  0xe9   :  { %614 = vrot.lane.b32.xlu1 %v3160_v20, %s2692_s30  ;;  %v310_v40 = vpop.permute.xlu0 %309  ;;  %v888_v41 = vld [vmem:[#allocation3 + $0x50] sm:$0xff] }
  0xea   :  { %351 = vst.msk [vmem:[#allocation3 + $0x70] sm:$0xff] %vm343_vm3, %v310_v40  ;;  %1073 = vmatmul.mubr.f32.gmra.mrb[10].mxu0 %v888_v41 }
  0xeb   :  { %v599_v38 = vpop.permute.xlu1 %598  ;;  %422 = vrot.lane.b32.xlu0 %v666_v36, %s2689_s4  ;;  %2405 = vmatprep.mubr.msk.f32.mxu0 %vm59_vm0, %v891_v39 }
  0xec   :  { %641 = vst.msk [vmem:[#allocation3 + $0x60] sm:$0xff] %vm634_vm6, %v599_v38 }
  0xed   :  { %712 = vrot.lane.b32.xlu1 %v666_v36, %s2693_s27  ;;  %v407_v44 = vpop.permute.xlu0 %406 }
  0xee   :  { %448 = vst.msk [vmem:[#allocation3 + $0x70] sm:$0xff] %vm440_vm4, %v407_v44 }
  0xef   :  { %v697_v43 = vpop.permute.xlu1 %696  ;;  %519 = vrot.lane.b32.xlu0 %v763_v42, %s2691_s24 }
  0xf0   :  { %739 = vst.msk [vmem:[#allocation3 + $0x60] sm:$0xff] %vm732_vm7, %v697_v43  ;;  %v905_v43 = vld [vmem:[#allocation3 + $0xd8] sm:$0xff] }
  0xf1   :  { %809 = vrot.lane.b32.xlu1 %v763_v42, %s2694_s20  ;;  %v504_v46 = vpop.permute.xlu0 %503 }
  0xf2   :  { %545 = vst.msk [vmem:[#allocation3 + $0x70] sm:$0xff] %vm537_vm5, %v504_v46 }
  0xf3   :  { %v794_v20 = vpop.permute.xlu1 %793  ;;  %714 = vrot.lane.b32.xlu0 %v667_v45, %s2693_s27 }
  0xf4   :  { %836 = vst.msk [vmem:[#allocation3 + $0x60] sm:$0xff] %vm829_vm8, %v794_v20 }
  0xf5   :  { %616 = vrot.lane.b32.xlu1 %v3174_v22, %s2692_s30  ;;  %v601_v49 = vpop.permute.xlu0 %600  ;;  %s4183_s30 = sld [smem:[#allocation6_spill]] }
  0xf6   :  { %642 = vst.msk [vmem:[#allocation3 + $0x70] sm:$0xff] %vm634_vm6, %v601_v49 }
  0xf7   :  { %v215_v48 = vpop.permute.xlu1 %214 }
  0xf8   :  { %255 = vst.msk [vmem:[#allocation3 + $0x80] sm:$0xff] %vm246_vm2, %v215_v48 }
  0xf9   :  { %811 = vrot.lane.b32.xlu1 %v764_v47, %s2694_s20  ;;  %v699_v22 = vpop.permute.xlu0 %698 }
  0xfa   :  { %740 = vst.msk [vmem:[#allocation3 + $0x70] sm:$0xff] %vm732_vm7, %v699_v22 }
  0xfb   :  { %v312_v51 = vpop.permute.xlu1 %311  ;;  %v890_v52 = vld [vmem:[#allocation3 + $0x60] sm:$0xff] }
  0xfc   :  { %352 = vst.msk [vmem:[#allocation3 + $0x80] sm:$0xff] %vm343_vm3, %v312_v51  ;;  %1078 = vmatmul.mubr.f32.gmra.mrb[12].mxu0 %v890_v52  ;;  %v907_v51 = vld [vmem:[#allocation3 + $0xe8] sm:$0xff] }
  0xfd   :  { %2406 = vmatprep.mubr.msk.f32.mxu0 %vm59_vm0, %v893_v50  ;;  %v796_v54 = vpop.permute.xlu0 %795 }
  0xfe   :  { %837 = vst.msk [vmem:[#allocation3 + $0x70] sm:$0xff] %vm829_vm8, %v796_v54 }
  0xff   :  { %v409_v53 = vpop.permute.xlu1 %408 }
 0x100   :  { %449 = vst.msk [vmem:[#allocation3 + $0x80] sm:$0xff] %vm440_vm4, %v409_v53 }
 0x101   :  { %v217_v56 = vpop.permute.xlu0 %216 }
 0x102   :  { %256 = vst.msk [vmem:[#allocation3 + $0x90] sm:$0xff] %vm246_vm2, %v217_v56 }
 0x103   :  { %v506_v55 = vpop.permute.xlu1 %505 }
 0x104   :  { %546 = vst.msk [vmem:[#allocation3 + $0x80] sm:$0xff] %vm537_vm5, %v506_v55 }
 0x105   :  { %v314_v59 = vpop.permute.xlu0 %313  ;;  %v892_v60 = vld [vmem:[#allocation3 + $0x70] sm:$0xff] }
 0x106   :  { %353 = vst.msk [vmem:[#allocation3 + $0x90] sm:$0xff] %vm343_vm3, %v314_v59  ;;  %1083 = vmatmul.mubr.f32.gmra.mrb[14].mxu0 %v892_v60  ;;  %v909_v59 = vld [vmem:[#allocation3 + $0xf8] sm:$0xff] }
 0x107   :  { %v603_v57 = vpop.permute.xlu1 %602  ;;  %2407 = vmatprep.mubr.msk.f32.mxu0 %vm59_vm0, %v895_v58 }
 0x108   :  { %643 = vst.msk [vmem:[#allocation3 + $0x80] sm:$0xff] %vm634_vm6, %v603_v57 }
 0x109   :  { %v411_v62 = vpop.permute.xlu0 %410 }
 0x10a   :  { %450 = vst.msk [vmem:[#allocation3 + $0x90] sm:$0xff] %vm440_vm4, %v411_v62 }
 0x10b   :  { %v701_v61 = vpop.permute.xlu1 %700 }
 0x10c   :  { %741 = vst.msk [vmem:[#allocation3 + $0x80] sm:$0xff] %vm732_vm7, %v701_v61 }
 0x10d   :  { %v508_v1 = vpop.permute.xlu0 %507 }
 0x10e   :  { %547 = vst.msk [vmem:[#allocation3 + $0x90] sm:$0xff] %vm537_vm5, %v508_v1 }
 0x10f   :  { %v798_v63 = vpop.permute.xlu1 %797 }
 0x110   :  { %838 = vst.msk [vmem:[#allocation3 + $0x80] sm:$0xff] %vm829_vm8, %v798_v63 }
 0x111   :  { %v605_v3 = vpop.permute.xlu0 %604 }
 0x112   :  { %644 = vst.msk [vmem:[#allocation3 + $0x90] sm:$0xff] %vm634_vm6, %v605_v3 }
 0x113   :  { %v219_v2 = vpop.permute.xlu1 %218 }
 0x114   :  { %257 = vst.msk [vmem:[#allocation3 + $0xa0] sm:$0xff] %vm246_vm2, %v219_v2 }
 0x115   :  { %v703_v10 = vpop.permute.xlu0 %702 }
 0x116   :  { %742 = vst.msk [vmem:[#allocation3 + $0x90] sm:$0xff] %vm732_vm7, %v703_v10 }
 0x117   :  { %v316_v6 = vpop.permute.xlu1 %315  ;;  %v894_v7 = vld [vmem:[#allocation3 + $0x80] sm:$0xff] }
 0x118   :  { %354 = vst.msk [vmem:[#allocation3 + $0xa0] sm:$0xff] %vm343_vm3, %v316_v6  ;;  %1088 = vmatmul.mubr.f32.gmra.mrb[16].mxu0 %v894_v7 }
 0x119   :  { %2408 = vmatprep.mubr.msk.f32.mxu0 %vm59_vm0, %v897_v5  ;;  %v800_v8 = vpop.permute.xlu0 %799 }
 0x11a   :  { %839 = vst.msk [vmem:[#allocation3 + $0x90] sm:$0xff] %vm829_vm8, %v800_v8 }
 0x11b   :  { %v413_v11 = vpop.permute.xlu1 %412 }
 0x11c   :  { %451 = vst.msk [vmem:[#allocation3 + $0xa0] sm:$0xff] %vm440_vm4, %v413_v11 }
 0x11d   :  { %v221_v15 = vpop.permute.xlu0 %220 }
 0x11e   :  { %258 = vst.msk [vmem:[#allocation3 + $0xb0] sm:$0xff] %vm246_vm2, %v221_v15 }
 0x11f   :  { %v510_v14 = vpop.permute.xlu1 %509 }
 0x120   :  { %548 = vst.msk [vmem:[#allocation3 + $0xa0] sm:$0xff] %vm537_vm5, %v510_v14 }
 0x121   :  { %v318_v19 = vpop.permute.xlu0 %317  ;;  %v896_v21 = vld [vmem:[#allocation3 + $0x90] sm:$0xff] }
 0x122   :  { %355 = vst.msk [vmem:[#allocation3 + $0xb0] sm:$0xff] %vm343_vm3, %v318_v19  ;;  %1093 = vmatmul.mubr.f32.gmra.mrb[18].mxu0 %v896_v21  ;;  %v1228_v19 = vld [vmem:[%s4183_s30] sm:$0xff]  ;;  %v1229_v21 = vld [vmem:[%s4183_s30 + $0x8] sm:$0xff] }
 0x123   :  { %v607_v9 = vpop.permute.xlu1 %606  ;;  %2409 = vmatprep.mubr.msk.f32.mxu0 %vm59_vm0, %v899_v18 }
 0x124   :  { %645 = vst.msk [vmem:[#allocation3 + $0xa0] sm:$0xff] %vm634_vm6, %v607_v9 }
 0x125   :  { %v415_v24 = vpop.permute.xlu0 %414 }
 0x126   :  { %452 = vst.msk [vmem:[#allocation3 + $0xb0] sm:$0xff] %vm440_vm4, %v415_v24 }
 0x127   :  { %v705_v23 = vpop.permute.xlu1 %704 }
 0x128   :  { %743 = vst.msk [vmem:[#allocation3 + $0xa0] sm:$0xff] %vm732_vm7, %v705_v23  ;;  %v3410_v23 = vpack.c.bf16 %v1229_v21, %v1228_v19 }
 0x129   :  { %v512_v12 = vpop.permute.xlu0 %511 }
 0x12a   :  { %549 = vst.msk [vmem:[#allocation3 + $0xb0] sm:$0xff] %vm537_vm5, %v512_v12  ;;  %2627 = vmatpush3.bf16.msra.mxu1 %v3410_v23 }
 0x12b   :  { %v802_v25 = vpop.permute.xlu1 %801  ;;  %2628 = vmatprep.subr.bf16.mxu1 %v2687_v4 }
 0x12c   :  { %840 = vst.msk [vmem:[#allocation3 + $0xa0] sm:$0xff] %vm829_vm8, %v802_v25 }
 0x12d   :  { %v609_v27 = vpop.permute.xlu0 %608 }
 0x12e   :  { %646 = vst.msk [vmem:[#allocation3 + $0xb0] sm:$0xff] %vm634_vm6, %v609_v27 }
 0x12f   :  { %v223_v26 = vpop.permute.xlu1 %222 }
 0x130   :  { %259 = vst.msk [vmem:[#allocation3 + $0xc0] sm:$0xff] %vm246_vm2, %v223_v26 }
 0x131   :  { %v707_v30 = vpop.permute.xlu0 %706 }
 0x132   :  { %744 = vst.msk [vmem:[#allocation3 + $0xb0] sm:$0xff] %vm732_vm7, %v707_v30 }
 0x133   :  { %v320_v13 = vpop.permute.xlu1 %319  ;;  %v898_v29 = vld [vmem:[#allocation3 + $0xa0] sm:$0xff] }
 0x134   :  { %356 = vst.msk [vmem:[#allocation3 + $0xc0] sm:$0xff] %vm343_vm3, %v320_v13  ;;  %1098 = vmatmul.mubr.f32.gmra.mrb[20].mxu0 %v898_v29 }
 0x135   :  { %2410 = vmatprep.mubr.msk.f32.mxu0 %vm59_vm0, %v901_v28  ;;  %v804_v32 = vpop.permute.xlu0 %803 }
 0x136   :  { %841 = vst.msk [vmem:[#allocation3 + $0xb0] sm:$0xff] %vm829_vm8, %v804_v32 }
 0x137   :  { %v417_v31 = vpop.permute.xlu1 %416 }
 0x138   :  { %453 = vst.msk [vmem:[#allocation3 + $0xc0] sm:$0xff] %vm440_vm4, %v417_v31 }
 0x139   :  { %v225_v16 = vpop.permute.xlu0 %224 }
 0x13a   :  { %260 = vst.msk [vmem:[#allocation3 + $0xd0] sm:$0xff] %vm246_vm2, %v225_v16  ;;  %v3419_v16 = vld [vmem:[%s4159_s5] ss:$0 sm:$0xff] }
 0x13b   :  { %v514_v33 = vpop.permute.xlu1 %513 }
 0x13c   :  { %550 = vst.msk [vmem:[#allocation3 + $0xc0] sm:$0xff] %vm537_vm5, %v514_v33 }
 0x13d   :  { %v322_v17 = vpop.permute.xlu0 %321  ;;  %v900_v36 = vld [vmem:[#allocation3 + $0xb0] sm:$0xff] }
 0x13e   :  { %357 = vst.msk [vmem:[#allocation3 + $0xd0] sm:$0xff] %vm343_vm3, %v322_v17  ;;  %1103 = vmatmul.mubr.f32.gmra.mrb[22].mxu0 %v900_v36 }
 0x13f   :  { %v611_v34 = vpop.permute.xlu1 %610  ;;  %2411 = vmatprep.mubr.msk.f32.mxu0 %vm59_vm0, %v903_v35 }
 0x140   :  { %647 = vst.msk [vmem:[#allocation3 + $0xc0] sm:$0xff] %vm634_vm6, %v611_v34 }
 0x141   :  { %v419_v38 = vpop.permute.xlu0 %418 }
 0x142   :  { %454 = vst.msk [vmem:[#allocation3 + $0xd0] sm:$0xff] %vm440_vm4, %v419_v38 }
 0x143   :  { %v709_v37 = vpop.permute.xlu1 %708 }
 0x144   :  { %745 = vst.msk [vmem:[#allocation3 + $0xc0] sm:$0xff] %vm732_vm7, %v709_v37 }
 0x145   :  { %v516_v40 = vpop.permute.xlu0 %515 }
 0x146   :  { %551 = vst.msk [vmem:[#allocation3 + $0xd0] sm:$0xff] %vm537_vm5, %v516_v40 }
 0x147   :  { %v806_v39 = vpop.permute.xlu1 %805 }
 0x148   :  { %842 = vst.msk [vmem:[#allocation3 + $0xc0] sm:$0xff] %vm829_vm8, %v806_v39 }
 0x149   :  { %v613_v42 = vpop.permute.xlu0 %612 }
 0x14a   :  { %648 = vst.msk [vmem:[#allocation3 + $0xd0] sm:$0xff] %vm634_vm6, %v613_v42 }
 0x14b   :  { %v227_v41 = vpop.permute.xlu1 %226 }
 0x14c   :  { %261 = vst.msk [vmem:[#allocation3 + $0xe0] sm:$0xff] %vm246_vm2, %v227_v41 }
 0x14d   :  { %v711_v45 = vpop.permute.xlu0 %710 }
 0x14e   :  { %746 = vst.msk [vmem:[#allocation3 + $0xd0] sm:$0xff] %vm732_vm7, %v711_v45 }
 0x14f   :  { %v324_v44 = vpop.permute.xlu1 %323  ;;  %v902_v20 = vld [vmem:[#allocation3 + $0xc0] sm:$0xff] }
 0x150   :  { %358 = vst.msk [vmem:[#allocation3 + $0xe0] sm:$0xff] %vm343_vm3, %v324_v44  ;;  %1108 = vmatmul.mubr.f32.gmra.mrb[24].mxu0 %v902_v20 }
 0x151   :  { %2412 = vmatprep.mubr.msk.f32.mxu0 %vm59_vm0, %v905_v43  ;;  %v808_v47 = vpop.permute.xlu0 %807 }
 0x152   :  { %843 = vst.msk [vmem:[#allocation3 + $0xd0] sm:$0xff] %vm829_vm8, %v808_v47 }
 0x153   :  { %v421_v46 = vpop.permute.xlu1 %420 }
 0x154   :  { %455 = vst.msk [vmem:[#allocation3 + $0xe0] sm:$0xff] %vm440_vm4, %v421_v46 }
 0x155   :  { %v229_v49 = vpop.permute.xlu0 %228 }
 0x156   :  { %262 = vst.msk [vmem:[#allocation3 + $0xf0] sm:$0xff] %vm246_vm2, %v229_v49 }
 0x157   :  { %v518_v48 = vpop.permute.xlu1 %517 }
 0x158   :  { %552 = vst.msk [vmem:[#allocation3 + $0xe0] sm:$0xff] %vm537_vm5, %v518_v48 }
 0x159   :  { %v326_v52 = vpop.permute.xlu0 %325  ;;  %v904_v22 = vld [vmem:[#allocation3 + $0xd0] sm:$0xff] }
 0x15a   :  { %359 = vst.msk [vmem:[#allocation3 + $0xf0] sm:$0xff] %vm343_vm3, %v326_v52  ;;  %1113 = vmatmul.mubr.f32.gmra.mrb[26].mxu0 %v904_v22 }
 0x15b   :  { %v615_v50 = vpop.permute.xlu1 %614  ;;  %2413 = vmatprep.mubr.msk.f32.mxu0 %vm59_vm0, %v907_v51 }
 0x15c   :  { %649 = vst.msk [vmem:[#allocation3 + $0xe0] sm:$0xff] %vm634_vm6, %v615_v50 }
 0x15d   :  { %v423_v54 = vpop.permute.xlu0 %422 }
 0x15e   :  { %456 = vst.msk [vmem:[#allocation3 + $0xf0] sm:$0xff] %vm440_vm4, %v423_v54 }
 0x15f   :  { %v713_v53 = vpop.permute.xlu1 %712 }
 0x160   :  { %747 = vst.msk [vmem:[#allocation3 + $0xe0] sm:$0xff] %vm732_vm7, %v713_v53 }
 0x161   :  { %v520_v56 = vpop.permute.xlu0 %519 }
 0x162   :  { %553 = vst.msk [vmem:[#allocation3 + $0xf0] sm:$0xff] %vm537_vm5, %v520_v56 }
 0x163   :  { %v810_v55 = vpop.permute.xlu1 %809 }
 0x164   :  { %844 = vst.msk [vmem:[#allocation3 + $0xe0] sm:$0xff] %vm829_vm8, %v810_v55 }
 0x165   :  { %v715_v58 = vpop.permute.xlu0 %714 }
 0x167   :  { %v617_v57 = vpop.permute.xlu1 %616 }
 0x168   :  { %650 = vst.msk [vmem:[#allocation3 + $0xf0] sm:$0xff] %vm634_vm6, %v617_v57 }
 0x169   :  { %748 = vst.msk [vmem:[#allocation3 + $0xf0] sm:$0xff] %vm732_vm7, %v715_v58 }
 0x16b   :  { %v812_v60 = vpop.permute.xlu1 %811  ;;  %v906_v61 = vld [vmem:[#allocation3 + $0xe0] sm:$0xff] }
 0x16c   :  { %845 = vst.msk [vmem:[#allocation3 + $0xf0] sm:$0xff] %vm829_vm8, %v812_v60  ;;  %1118 = vmatmul.mubr.f32.gmra.mrb[28].mxu0 %v906_v61 }
 0x16d   :  { %2414 = vmatprep.mubr.msk.f32.mxu0 %vm59_vm0, %v909_v59 }
 0x173   :  { %v908_v62 = vld [vmem:[#allocation3 + $0xf0] sm:$0xff] }
 0x174   :  { %1123 = vmatmul.mubr.f32.gmra.mrb[30].mxu0 %v908_v62 }
 0x17b   :  { %v1049_v63 = vpop.f32.mrb[0].mxu0 }
 0x17c   :  { %v1051_v1 = vpop.f32.mrb[1].mxu0  ;;  %v3425_v35 = vadd.f32 %v3419_v16, %v1049_v63 }
 0x17e   :  { %v1170_v38 = vmul.f32 %v3425_v35, %v3425_v35  ;;  %v1128_v42 = vsel %vm59_vm0, %v3425_v35, 0.0 }
 0x180   :  { %v1186_v49 = vsel %vm59_vm0, %v1170_v38, 0.0 }
 0x185   :  { %v1054_v2 = vpop.f32.mrb[2].mxu0 }
 0x186   :  { %v1056_v3 = vpop.f32.mrb[3].mxu0  ;;  %v3422_v34 = vadd.f32 %v3419_v16, %v1054_v2 }
 0x188   :  { %v1171_v36 = vmul.f32 %v3422_v34, %v3422_v34  ;;  %v1129_v39 = vsel %vm59_vm0, %v3422_v34, 0.0 }
 0x189   :  { %v1130_v47 = vadd.f32 %v1129_v39, %v1128_v42 }
 0x18a   :  { %v1187_v43 = vsel %vm59_vm0, %v1171_v36, 0.0 }
 0x18b   :  { %v1188_v22 = vadd.f32 %v1187_v43, %v1186_v49 }
 0x197   :  { %v1059_v5 = vpop.f32.mrb[4].mxu0 }
 0x198   :  { %v1061_v6 = vpop.f32.mrb[5].mxu0  ;;  %v3428_v17 = vadd.f32 %v3419_v16, %v1059_v5 }
 0x19a   :  { %v1172_v40 = vmul.f32 %v3428_v17, %v3428_v17  ;;  %v1131_v44 = vsel %vm59_vm0, %v3428_v17, 0.0 }
 0x19b   :  { %v1132_v53 = vadd.f32 %v1131_v44, %v1130_v47 }
 0x19c   :  { %v1189_v50 = vsel %vm59_vm0, %v1172_v40, 0.0 }
 0x19d   :  { %v1190_v59 = vadd.f32 %v1189_v50, %v1188_v22 }
 0x1a1   :  { %v1064_v7 = vpop.f32.mrb[6].mxu0 }
 0x1a2   :  { %v1066_v10 = vpop.f32.mrb[7].mxu0  ;;  %v3433_v37 = vadd.f32 %v3419_v16, %v1064_v7 }
 0x1a4   :  { %v1173_v20 = vmul.f32 %v3433_v37, %v3433_v37  ;;  %v1133_v51 = vsel %vm59_vm0, %v3433_v37, 0.0 }
 0x1a5   :  { %v1134_v60 = vadd.f32 %v1133_v51, %v1132_v53 }
 0x1a6   :  { %v1191_v55 = vsel %vm59_vm0, %v1173_v20, 0.0 }
 0x1a7   :  { %v1192_v3 = vadd.f32 %v1191_v55, %v1190_v59 }
 0x1b3   :  { %v1069_v11 = vpop.f32.mrb[8].mxu0 }
 0x1b4   :  { %v1071_v8 = vpop.f32.mrb[9].mxu0  ;;  %v3442_v41 = vadd.f32 %v3419_v16, %v1069_v11 }
 0x1b6   :  { %v1174_v52 = vmul.f32 %v3442_v41, %v3442_v41  ;;  %v1135_v56 = vsel %vm59_vm0, %v3442_v41, 0.0 }
 0x1b7   :  { %v1136_v5 = vadd.f32 %v1135_v56, %v1134_v60 }
 0x1b8   :  { %v1193_v63 = vsel %vm59_vm0, %v1174_v52, 0.0 }
 0x1bd   :  { %v1074_v14 = vpop.f32.mrb[10].mxu0 }
 0x1be   :  { %v1076_v15 = vpop.f32.mrb[11].mxu0  ;;  %v3452_v45 = vadd.f32 %v3419_v16, %v1074_v14  ;;  %v1194_v14 = vadd.f32 %v1193_v63, %v1192_v3 }
 0x1c0   :  { %v1175_v57 = vmul.f32 %v3452_v45, %v3452_v45  ;;  %v1137_v1 = vsel %vm59_vm0, %v3452_v45, 0.0 }
 0x1c1   :  { %v1138_v15 = vadd.f32 %v1137_v1, %v1136_v5 }
 0x1c2   :  { %v1195_v7 = vsel %vm59_vm0, %v1175_v57, 0.0 }
 0x1cf   :  { %v1079_v9 = vpop.f32.mrb[12].mxu0 }
 0x1d0   :  { %v1081_v18 = vpop.f32.mrb[13].mxu0  ;;  %v3461_v54 = vadd.f32 %v3419_v16, %v1079_v9 }
 0x1d2   :  { %v1176_v6 = vmul.f32 %v3461_v54, %v3461_v54  ;;  %v1139_v10 = vsel %vm59_vm0, %v3461_v54, 0.0 }
 0x1d9   :  { %v1084_v24 = vpop.f32.mrb[14].mxu0 }
 0x1da   :  { %v1086_v25 = vpop.f32.mrb[15].mxu0  ;;  %v3472_v61 = vadd.f32 %v3419_v16, %v1084_v24 }
 0x1dc   :  { %v1177_v9 = vmul.f32 %v3472_v61, %v3472_v61  ;;  %v1141_v19 = vsel %vm59_vm0, %v3472_v61, 0.0 }
 0x1eb   :  { %v1089_v12 = vpop.f32.mrb[16].mxu0 }
 0x1ec   :  { %v1091_v26 = vpop.f32.mrb[17].mxu0  ;;  %v3475_v62 = vadd.f32 %v3419_v16, %v1089_v12  ;;  %v1196_v12 = vadd.f32 %v1195_v7, %v1194_v14 }
 0x1ed   :  { %v1140_v26 = vadd.f32 %v1139_v10, %v1138_v15 }
 0x1ee   :  { %v1178_v18 = vmul.f32 %v3475_v62, %v3475_v62 }
 0x1f0   :  { %v1207_v36 = vsel %vm59_vm0, %v1178_v18, 0.0 }
 0x1f5   :  { %v1094_v27 = vpop.f32.mrb[18].mxu0 }
 0x1f6   :  { %v1096_v28 = vpop.f32.mrb[19].mxu0  ;;  %v3469_v58 = vadd.f32 %v3419_v16, %v1094_v27  ;;  %v1197_v27 = vsel %vm59_vm0, %v1176_v6, 0.0 }
 0x1f7   :  { %v1149_v28 = vsel %vm59_vm0, %v3475_v62, 0.0 }
 0x1f8   :  { %v1179_v11 = vmul.f32 %v3469_v58, %v3469_v58  ;;  %v1150_v21 = vsel %vm59_vm0, %v3469_v58, 0.0 }
 0x1f9   :  { %v1151_v38 = vadd.f32 %v1150_v21, %v1149_v28 }
 0x207   :  { %v1099_v13 = vpop.f32.mrb[20].mxu0 }
 0x208   :  { %v1101_v29 = vpop.f32.mrb[21].mxu0  ;;  %v3481_v2 = vadd.f32 %v3419_v16, %v1099_v13  ;;  %v1208_v13 = vsel %vm59_vm0, %v1179_v11, 0.0 }
 0x209   :  { %v1209_v47 = vadd.f32 %v1208_v13, %v1207_v36 }
 0x20a   :  { %v1180_v24 = vmul.f32 %v3481_v2, %v3481_v2  ;;  %v1152_v29 = vsel %vm59_vm0, %v3481_v2, 0.0 }
 0x20c   :  { %v1210_v40 = vsel %vm59_vm0, %v1180_v24, 0.0 }
 0x20d   :  { %v1211_v53 = vadd.f32 %v1210_v40, %v1209_v47 }
 0x211   :  { %v1104_v30 = vpop.f32.mrb[22].mxu0 }
 0x212   :  { %v1106_v31 = vpop.f32.mrb[23].mxu0  ;;  %v3491_v8 = vadd.f32 %v3419_v16, %v1104_v30 }
 0x214   :  { %v1181_v30 = vmul.f32 %v3491_v8, %v3491_v8  ;;  %v1154_v42 = vsel %vm59_vm0, %v3491_v8, 0.0 }
 0x216   :  { %v1212_v49 = vsel %vm59_vm0, %v1181_v30, 0.0 }
 0x217   :  { %v1213_v60 = vadd.f32 %v1212_v49, %v1211_v53 }
 0x223   :  { %v1109_v32 = vpop.f32.mrb[24].mxu0 }
 0x224   :  { %v1111_v33 = vpop.f32.mrb[25].mxu0  ;;  %v3504_v25 = vadd.f32 %v3419_v16, %v1109_v32  ;;  %v1142_v32 = vadd.f32 %v1141_v19, %v1140_v26 }
 0x225   :  { %v1199_v33 = vsel %vm59_vm0, %v1177_v9, 0.0 }
 0x226   :  { %v1182_v43 = vmul.f32 %v3504_v25, %v3504_v25  ;;  %v1156_v50 = vsel %vm59_vm0, %v3504_v25, 0.0  ;;  %v1143_v52 = vrot.slane %v1142_v32, 4 }
 0x228   :  { %v1214_v56 = vsel %vm59_vm0, %v1182_v43, 0.0  ;;  %v1144_v5 = vadd.f32 %v1143_v52, %v1142_v32 }
 0x229   :  { %v1215_v7 = vadd.f32 %v1214_v56, %v1213_v60  ;;  %v1577_v56 = vld [vmem:[%s4160_s9] sm:$0xff] }
 0x22d   :  { %v1114_v46 = vpop.f32.mrb[26].mxu0 }
 0x22e   :  { %v1116_v48 = vpop.f32.mrb[27].mxu0  ;;  %v3515_v31 = vadd.f32 %v3419_v16, %v1114_v46  ;;  %v1198_v46 = vadd.f32 %v1197_v27, %v1196_v12  ;;  %v1145_v12 = vrot.slane %v1144_v5, 2 }
 0x22f   :  { %v1153_v48 = vadd.f32 %v1152_v29, %v1151_v38 }
 0x230   :  { %v1183_v51 = vmul.f32 %v3515_v31, %v3515_v31  ;;  %v1200_v22 = vadd.f32 %v1199_v33, %v1198_v46  ;;  %v1158_v57 = vsel %vm59_vm0, %v3515_v31, 0.0  ;;  %v1146_v36 = vadd.f32 %v1145_v12, %v1144_v5 }
 0x231   :  { %v1155_v55 = vadd.f32 %v1154_v42, %v1153_v48 }
 0x232   :  { %v1216_v1 = vsel %vm59_vm0, %v1183_v51, 0.0  ;;  %v1201_v6 = vrot.slane %v1200_v22, 4  ;;  %v1147_v43 = vrot.slane %v1146_v36, 1 }
 0x233   :  { %v1157_v63 = vadd.f32 %v1156_v50, %v1155_v55  ;;  %v1217_v18 = vadd.f32 %v1216_v1, %v1215_v7 }
 0x234   :  { %v1202_v26 = vadd.f32 %v1201_v6, %v1200_v22  ;;  %v1148_v48 = vadd.f32 %v1147_v43, %v1146_v36 }
 0x235   :  { %v1159_v10 = vadd.f32 %v1158_v57, %v1157_v63  ;;  %v1578_v57 = vld [vmem:[%s4160_s9 + $0x8] sm:$0xff]  ;;  %v1389_v63 = vlaneseq }
 0x236   :  { %v1203_v32 = vrot.slane %v1202_v26, 2 }
 0x237   :  { %v1390_v7 = vshrl.u32 %v1389_v63, 7 }
 0x238   :  { %v1204_v40 = vadd.f32 %v1203_v32, %v1202_v26 }
 0x239   :  { %v3567_v12 = vsub.s32 0, %v1390_v7 }
 0x23a   :  { %v1205_v50 = vrot.slane %v1204_v40, 1 }
 0x23c   :  { %v1206_v53 = vadd.f32 %v1205_v50, %v1204_v40  ;;  %v3584_v40 = vld [vmem:[%s4161_s6] ss:$0 sm:$0xff] }
 0x23f   :  { %v1119_v39 = vpop.f32.mrb[28].mxu0 }
 0x240   :  { %v3525_v44 = vadd.f32 %v3419_v16, %v1119_v39  ;;  %v1121_v20 = vpop.f32.mrb[29].mxu0 }
 0x242   :  { %v1184_v59 = vmul.f32 %v3525_v44, %v3525_v44  ;;  %v1160_v3 = vsel %vm59_vm0, %v3525_v44, 0.0 }
 0x243   :  { %v1161_v19 = vadd.f32 %v1160_v3, %v1159_v10 }
 0x244   :  { %v1218_v14 = vsel %vm59_vm0, %v1184_v59, 0.0  ;;  %v2631_v59 = vpack.c.bf16 %v1578_v57, %v1577_v56 }
 0x245   :  { %v1219_v27 = vadd.f32 %v1218_v14, %v1217_v18 }
 0x247   :  { %v1124_v11 = vpop.f32.mrb[30].mxu0 }
 0x248   :  { %v3542_v15 = vadd.f32 %v3419_v16, %v1124_v11  ;;  %v1126_v9 = vpop.f32.mrb[31].mxu0 }
 0x24a   :  { %v1162_v21 = vsel %vm59_vm0, %v3542_v15, 0.0  ;;  %v1185_v24 = vmul.f32 %v3542_v15, %v3542_v15 }
 0x24b   :  { %v1163_v28 = vadd.f32 %v1162_v21, %v1161_v19 }
 0x24c   :  { %v1220_v13 = vsel %vm59_vm0, %v1185_v24, 0.0 }
 0x24d   :  { %v1164_v29 = vrot.slane %v1163_v28, 4  ;;  %v1221_v30 = vadd.f32 %v1220_v13, %v1219_v27 }
 0x24f   :  { %v1165_v16 = vadd.f32 %v1164_v29, %v1163_v28  ;;  %v1222_v33 = vrot.slane %v1221_v30, 4 }
 0x251   :  { %v1166_v38 = vrot.slane %v1165_v16, 2  ;;  %v1223_v39 = vadd.f32 %v1222_v33, %v1221_v30 }
 0x253   :  { %v1224_v42 = vrot.slane %v1223_v39, 2  ;;  %v1167_v20 = vadd.f32 %v1166_v38, %v1165_v16 }
 0x255   :  { %v1225_v46 = vadd.f32 %v1224_v42, %v1223_v39  ;;  %v1168_v47 = vrot.slane %v1167_v20, 1 }
 0x257   :  { %v1169_v49 = vadd.f32 %v1168_v47, %v1167_v20  ;;  %v1226_v51 = vrot.slane %v1225_v46, 1 }
 0x259   :  { %v1233_v52 = vsel %vm1232_vm10, %v1169_v49, %v1148_v48  ;;  %v1227_v22 = vadd.f32 %v1226_v51, %v1225_v46 }
 0x25a   :  { %2501 = vmatmul.mubr.msk.f32.vlgmr.msra.gmra.mrb[0].mxu1 %vm59_vm0, %v1233_v52 }
 0x25b   :  { %2630 = vmatpush3.bf16.msra.mxu1 %v3410_v23  ;;  %2507 = vmatprep.mubr.msk.f32.mxu1 %vm2695_vm9, %v2686_v0  ;;  %v1308_v55 = vsel %vm1232_vm10, %v1227_v22, %v1206_v53  ;;  %v2696_v23 = vmov 1966171168  }
 0x25c   :  { %2632 = vmatprep.subr.bf16.mxu1 %v2631_v59  ;;  %v1387_v60 = vunpack.c.l.s4 %v2696_v23 }
 0x25e   :  { %2508 = vmatmul.mubr.msk.f32.vlgmr.msra.gmra.mrb[2].mxu1 %vm59_vm0, %v1308_v55  ;;  %v1388_v6 = vunpack.c.0.s8 %v1387_v60  ;;  %v1545_v60 = vld [vmem:[%s4163_s1] sm:$0xff] }
 0x25f   :  { %2634 = vmatpush3.bf16.msra.mxu1 %v2631_v59 }
 0x260   :  { %2635 = vmatprep.subr.bf16.mxu1 %v2687_v4  ;;  %v3563_v9 = vsub.s32 %v1388_v6, %v1390_v7 }
 0x32d   :  { %v1302_v1 = vpop.f32.mrb[0].mxu1 }
 0x32e   :  { %v2502_v3 = vpop.f32.mrb[1].mxu1  ;;  %v1381_v5 = vmul.f32 %v1302_v1, %v1302_v1  ;;  %v1392_v19 = vrot.slane %v1302_v1, %v3563_v9 }
 0x330   :  { %v1393_v21 = vcombine.high %v1392_v19, %v1392_v19  ;;  %v1400_v24 = vrot.slane %v1392_v19, %v3563_v9 }
 0x331   :  { %v1377_v10 = vpop.f32.mrb[2].mxu1 }
 0x332   :  { %v1382_v11 = vsub.f32 %v1377_v10, %v1381_v5  ;;  %v2509_v14 = vpop.f32.mrb[3].mxu1  ;;  %v1407_v27 = vrot.slane %v1393_v21, %v3563_v9  ;;  %v1411_v28 = vrot.slane %v1400_v24, %v3567_v12  ;;  %v1547_v10 = vld [vmem:[%s4163_s1 + $0x10] sm:$0xff] }
 0x334   :  { %v1383_v18 = vadd.f32 1e-05, %v1382_v11  ;;  %v3574_v32 = vrot.slane %v1407_v27, %v3567_v12  ;;  %v1418_v16 = vsub.f32 %v3425_v35, %v1411_v28  ;;  %v1419_v36 = vsub.f32 %v3422_v34, %v1411_v28 }
 0x335   :  { %v1420_v38 = vsub.f32 %v3428_v17, %v1411_v28  ;;  %v1421_v39 = vsub.f32 %v3433_v37, %v1411_v28  ;;  %v1422_v42 = vsub.f32 %v3442_v41, %v1411_v28  ;;  %v1423_v43 = vsub.f32 %v3452_v45, %v1411_v28  ;;  %v3594_v37 = vld [vmem:[%s4162_s7] ss:$0 sm:$0xff] }
 0x336   :  { %2682 = vrsqrt.f32 %v1383_v18  ;;  %v1424_v20 = vsub.f32 %v3461_v54, %v1411_v28  ;;  %v1425_v35 = vsub.f32 %v3472_v61, %v1411_v28  ;;  %v1426_v53 = vsub.f32 %v3475_v62, %v3574_v32  ;;  %v1546_v62 = vld [vmem:[%s4163_s1 + $0x8] sm:$0xff] }
 0x337   :  { %v1427_v55 = vsub.f32 %v3469_v58, %v3574_v32  ;;  %v1428_v23 = vsub.f32 %v3481_v2, %v3574_v32  ;;  %v1429_v11 = vsub.f32 %v3491_v8, %v3574_v32  ;;  %v1430_v14 = vsub.f32 %v3504_v25, %v3574_v32 }
 0x338   :  { %v1431_v18 = vsub.f32 %v3515_v31, %v3574_v32  ;;  %v1432_v19 = vsub.f32 %v3525_v44, %v3574_v32  ;;  %v1433_v27 = vsub.f32 %v3542_v15, %v3574_v32  ;;  %v1548_v31 = vld [vmem:[%s4163_s1 + $0x18] sm:$0xff]  ;;  %v1549_v15 = vld [vmem:[%s4163_s1 + $0x20] sm:$0xff] }
 0x340   :  { %v2683_v26 = vpop.eup %2682 }
 0x341   :  { %v1441_v13 = vrot.slane %v2683_v26, %v3563_v9 }
 0x343   :  { %v1442_v29 = vcombine.high %v1441_v13, %v1441_v13  ;;  %v1449_v30 = vrot.slane %v1441_v13, %v3563_v9 }
 0x345   :  { %v1460_v33 = vrot.slane %v1449_v30, %v3567_v12  ;;  %v1456_v46 = vrot.slane %v1442_v29, %v3563_v9 }
 0x347   :  { %v1467_v34 = vmul.f32 %v1460_v33, %v1418_v16  ;;  %v1468_v47 = vmul.f32 %v1460_v33, %v1419_v36  ;;  %v1469_v17 = vmul.f32 %v1460_v33, %v1420_v38  ;;  %v1470_v48 = vmul.f32 %v1460_v33, %v1421_v39 }
 0x348   :  { %v1471_v49 = vmul.f32 %v1460_v33, %v1422_v42  ;;  %v1472_v50 = vmul.f32 %v1460_v33, %v1423_v43  ;;  %v1473_v41 = vmul.f32 %v1460_v33, %v1424_v20  ;;  %v1474_v51 = vmul.f32 %v1460_v33, %v1425_v35 }
 0x349   :  { %v1490_v45 = vmul.f32 %v3584_v40, %v1467_v34  ;;  %v1491_v54 = vmul.f32 %v3584_v40, %v1468_v47  ;;  %v1492_v61 = vmul.f32 %v3584_v40, %v1469_v17  ;;  %v1493_v52 = vmul.f32 %v3584_v40, %v1470_v48  ;;  %v1550_v47 = vld [vmem:[%s4163_s1 + $0x28] sm:$0xff] }
 0x34a   :  { %v1494_v22 = vmul.f32 %v3584_v40, %v1471_v49  ;;  %v1495_v1 = vmul.f32 %v3584_v40, %v1472_v50  ;;  %v1496_v3 = vmul.f32 %v3584_v40, %v1473_v41  ;;  %v1464_v5 = vrot.slane %v1456_v46, %v3567_v12  ;;  %v1551_v50 = vld [vmem:[%s4163_s1 + $0x30] sm:$0xff] }
 0x34b   :  { %v1513_v56 = vadd.f32 %v3594_v37, %v1490_v45  ;;  %v1514_v57 = vadd.f32 %v3594_v37, %v1491_v54  ;;  %v1515_v59 = vadd.f32 %v3594_v37, %v1492_v61  ;;  %v1516_v63 = vadd.f32 %v3594_v37, %v1493_v52  ;;  %v1552_v52 = vld [vmem:[%s4163_s1 + $0x38] sm:$0xff] }
 0x34c   :  { %v1517_v58 = vadd.f32 %v3594_v37, %v1494_v22  ;;  %v1497_v26 = vmul.f32 %v3584_v40, %v1474_v51  ;;  %v1518_v8 = vadd.f32 %v3594_v37, %v1495_v1  ;;  %v1519_v29 = vadd.f32 %v3594_v37, %v1496_v3 }
 0x34d   :  { %v1529_v6 = vmax.f32 %v1513_v56, 0.0  ;;  %v1530_v2 = vmax.f32 %v1514_v57, 0.0  ;;  %v1531_v7 = vmax.f32 %v1515_v59, 0.0  ;;  %v1532_v28 = vmax.f32 %v1516_v63, 0.0  ;;  %v1553_v56 = vld [vmem:[%s4163_s1 + $0x40] sm:$0xff]  ;;  %v1554_v63 = vld [vmem:[%s4163_s1 + $0x48] sm:$0xff] }
 0x34e   :  { %v1533_v13 = vmax.f32 %v1517_v58, 0.0  ;;  %v1475_v44 = vmul.f32 %v1464_v5, %v1426_v53  ;;  %v1476_v30 = vmul.f32 %v1464_v5, %v1427_v55  ;;  %v1477_v16 = vmul.f32 %v1464_v5, %v1428_v23 }
 0x34f   :  { %v1561_v21 = vmul.f32 %v1545_v60, %v1529_v6  ;;  %v1562_v24 = vmul.f32 %v1546_v62, %v1530_v2  ;;  %v1563_v25 = vmul.f32 %v1547_v10, %v1531_v7  ;;  %v1478_v32 = vmul.f32 %v1464_v5, %v1429_v11 }
 0x350   :  { %v1479_v33 = vmul.f32 %v1464_v5, %v1430_v14  ;;  %v1480_v36 = vmul.f32 %v1464_v5, %v1431_v18  ;;  %v1481_v38 = vmul.f32 %v1464_v5, %v1432_v19  ;;  %v1498_v39 = vmul.f32 %v3584_v40, %v1475_v44  ;;  %v1556_v14 = vld [vmem:[%s4163_s1 + $0x58] sm:$0xff] }
 0x351   :  { %2514 = vmatprep.mubr.msk.f32.mxu1 %vm59_vm0, %v1561_v21  ;;  %v1482_v42 = vmul.f32 %v1464_v5, %v1433_v27  ;;  %v1564_v43 = vmul.f32 %v1548_v31, %v1532_v28  ;;  %v1534_v20 = vmax.f32 %v1518_v8, 0.0  ;;  %v1520_v35 = vadd.f32 %v3594_v37, %v1497_v26  ;;  %v1555_v5 = vld [vmem:[%s4163_s1 + $0x50] sm:$0xff]  ;;  %v1557_v21 = vld [vmem:[%s4163_s1 + $0x60] sm:$0xff]  ;;  %v1558_v28 = vld [vmem:[%s4163_s1 + $0x68] sm:$0xff] }
 0x352   :  { %2515 = vmatmul.mubr.msk.f32.vlgmr.msra.gmra.mrb[4].mxu1 %vm59_vm0, %v1562_v24  ;;  %v1499_v46 = vmul.f32 %v3584_v40, %v1476_v30  ;;  %v1565_v34 = vmul.f32 %v1549_v15, %v1533_v13  ;;  %v1535_v17 = vmax.f32 %v1519_v29, 0.0  ;;  %v1521_v48 = vadd.f32 %v3594_v37, %v1498_v39  ;;  %v1559_v8 = vld [vmem:[%s4163_s1 + $0x70] sm:$0xff]  ;;  %v1912_v30 = vld [vmem:[%s4164_s13] sm:$0xff]  ;;  %v1917_v39 = vld [vmem:[%s4164_s13 + $0x28] sm:$0xff] }
 0x353   :  { %2517 = vmatprep.mubr.msk.f32.mxu1 %vm59_vm0, %v1563_v25  ;;  %v1500_v49 = vmul.f32 %v3584_v40, %v1477_v16  ;;  %v1566_v41 = vmul.f32 %v1550_v47, %v1534_v20  ;;  %v1536_v45 = vmax.f32 %v1520_v35, 0.0  ;;  %v1501_v61 = vmul.f32 %v3584_v40, %v1478_v32  ;;  %v1913_v16 = vld [vmem:[%s4164_s13 + $0x8] sm:$0xff]  ;;  %v1914_v32 = vld [vmem:[%s4164_s13 + $0x10] sm:$0xff]  ;;  %v1919_v20 = vld [vmem:[%s4164_s13 + $0x38] sm:$0xff] }
 0x354   :  { %v1522_v54 = vadd.f32 %v3594_v37, %v1499_v46  ;;  %v1567_v51 = vmul.f32 %v1551_v50, %v1535_v17  ;;  %v1537_v22 = vmax.f32 %v1521_v48, 0.0  ;;  %v1502_v55 = vmul.f32 %v3584_v40, %v1479_v33  ;;  %v1915_v33 = vld [vmem:[%s4164_s13 + $0x18] sm:$0xff]  ;;  %v3754_v46 = vld [vmem:[%s4165_s10] ss:$0 sm:$0xff] }
 0x355   :  { %v1523_v53 = vadd.f32 %v3594_v37, %v1500_v49  ;;  %v1568_v57 = vmul.f32 %v1552_v52, %v1536_v45  ;;  %v1524_v23 = vadd.f32 %v3594_v37, %v1501_v61  ;;  %v1503_v60 = vmul.f32 %v3584_v40, %v1480_v36 }
 0x356   :  { %2518 = vmatmul.mubr.msk.f32.gmra.mrb[6].mxu1 %vm59_vm0, %v1564_v43  ;;  %v1538_v59 = vmax.f32 %v1522_v54, 0.0  ;;  %v1569_v62 = vmul.f32 %v1553_v56, %v1537_v22  ;;  %v1525_v1 = vadd.f32 %v3594_v37, %v1502_v55  ;;  %v1504_v3 = vmul.f32 %v3584_v40, %v1481_v38  ;;  %v1916_v38 = vld [vmem:[%s4164_s13 + $0x20] sm:$0xff]  ;;  %v1918_v43 = vld [vmem:[%s4164_s13 + $0x30] sm:$0xff] }
 0x357   :  { %2520 = vmatprep.mubr.msk.f32.mxu1 %vm59_vm0, %v1565_v34  ;;  %v1539_v58 = vmax.f32 %v1523_v53, 0.0  ;;  %v1540_v2 = vmax.f32 %v1524_v23, 0.0  ;;  %v1526_v7 = vadd.f32 %v3594_v37, %v1503_v60  ;;  %v1505_v10 = vmul.f32 %v3584_v40, %v1482_v42 }
 0x358   :  { %v1570_v6 = vmul.f32 %v1554_v63, %v1538_v59  ;;  %v1541_v18 = vmax.f32 %v1525_v1, 0.0  ;;  %v1527_v19 = vadd.f32 %v3594_v37, %v1504_v3  ;;  %v3717_v15 = vpack.c.bf16 %v1913_v16, %v1912_v30 }
 0x359   :  { %v1571_v11 = vmul.f32 %v1555_v5, %v1539_v58  ;;  %v1572_v24 = vmul.f32 %v1556_v14, %v1540_v2  ;;  %v1542_v26 = vmax.f32 %v1526_v7, 0.0  ;;  %v1528_v40 = vadd.f32 %v3594_v37, %v1505_v10  ;;  %v1560_v37 = vld [vmem:[%s4163_s1 + $0x78] sm:$0xff] }
 0x35a   :  { %2521 = vmatmul.mubr.msk.f32.gmra.mrb[8].mxu1 %vm59_vm0, %v1566_v41  ;;  %v1573_v27 = vmul.f32 %v1557_v21, %v1541_v18  ;;  %v1543_v13 = vmax.f32 %v1527_v19, 0.0  ;;  %v3727_v36 = vpack.c.bf16 %v1915_v33, %v1914_v32  ;;  %v3736_v42 = vpack.c.bf16 %v1917_v39, %v1916_v38 }
 0x35b   :  { %2523 = vmatprep.mubr.msk.f32.mxu1 %vm59_vm0, %v1567_v51  ;;  %v1574_v29 = vmul.f32 %v1558_v28, %v1542_v26  ;;  %v1544_v25 = vmax.f32 %v1528_v40, 0.0  ;;  %2637 = vmatpush3.bf16.msra.mxu1 %v3717_v15  ;;  %v3746_v35 = vpack.c.bf16 %v1919_v20, %v1918_v43 }
 0x35c   :  { %v1575_v31 = vmul.f32 %v1559_v8, %v1543_v13  ;;  %2638 = vmatprep.subr.bf16.mxu1 %v2687_v4 }
 0x35d   :  { %v1576_v44 = vmul.f32 %v1560_v37, %v1544_v25 }
 0x35e   :  { %2524 = vmatmul.mubr.msk.f32.gmra.mrb[10].mxu1 %vm59_vm0, %v1568_v57 }
 0x35f   :  { %2526 = vmatprep.mubr.msk.f32.mxu1 %vm59_vm0, %v1569_v62  ;;  %2640 = vmatpush3.bf16.msra.mxu1 %v3727_v36 }
 0x360   :  { %2641 = vmatprep.subr.bf16.mxu1 %v2687_v4 }
 0x362   :  { %2527 = vmatmul.mubr.msk.f32.gmra.mrb[12].mxu1 %vm59_vm0, %v1570_v6 }
 0x363   :  { %2529 = vmatprep.mubr.msk.f32.mxu1 %vm59_vm0, %v1571_v11  ;;  %2643 = vmatpush3.bf16.msra.mxu1 %v3736_v42 }
 0x364   :  { %2644 = vmatprep.subr.bf16.mxu1 %v2687_v4 }
 0x366   :  { %2530 = vmatmul.mubr.msk.f32.gmra.mrb[14].mxu1 %vm59_vm0, %v1572_v24 }
 0x367   :  { %2532 = vmatprep.mubr.msk.f32.mxu1 %vm59_vm0, %v1573_v27  ;;  %2646 = vmatpush3.bf16.msra.mxu1 %v3746_v35 }
 0x368   :  { %2647 = vmatprep.subr.bf16.mxu1 %v2687_v4 }
 0x36a   :  { %2533 = vmatmul.mubr.msk.f32.gmra.mrb[16].mxu1 %vm59_vm0, %v1574_v29 }
 0x36b   :  { %2535 = vmatprep.mubr.msk.f32.mxu1 %vm59_vm0, %v1575_v31 }
 0x36e   :  { %2536 = vmatmul.mubr.msk.f32.gmra.mrb[18].mxu1 %vm59_vm0, %v1576_v44 }
 0x36f   :  { %2554 = vmatprep.mubr.msk.f32.mxu1 %vm2695_vm9, %v2686_v0 }
 0x425   :  { %v2516_v34 = vpop.f32.mrb[4].mxu1 }
 0x426   :  { %v1706_v47 = vadd.f32 %v2516_v34, %v3754_v46  ;;  %v1700_v17 = vpop.f32.mrb[5].mxu1 }
 0x427   :  { %v1701_v48 = vadd.f32 %v3754_v46, %v1700_v17 }
 0x428   :  { %1781 = vst.msk [vmem:[%s4166_s18 + $0x8] sm:$0xff] %vm1779_vm11, %v1706_v47 }
 0x429   :  { %1780 = vst.msk [vmem:[%s4166_s18] sm:$0xff] %vm1779_vm11, %v1701_v48  ;;  %v2519_v49 = vpop.f32.mrb[6].mxu1 }
 0x42a   :  { %v1716_v50 = vadd.f32 %v2519_v49, %v3754_v46  ;;  %v1710_v41 = vpop.f32.mrb[7].mxu1 }
 0x42b   :  { %v1711_v45 = vadd.f32 %v3754_v46, %v1710_v41 }
 0x42c   :  { %1783 = vst.msk [vmem:[%s4166_s18 + $0x18] sm:$0xff] %vm1779_vm11, %v1716_v50 }
 0x42d   :  { %1782 = vst.msk [vmem:[%s4166_s18 + $0x10] sm:$0xff] %vm1779_vm11, %v1711_v45  ;;  %v2522_v54 = vpop.f32.mrb[8].mxu1 }
 0x42e   :  { %v1726_v61 = vadd.f32 %v2522_v54, %v3754_v46  ;;  %v1720_v51 = vpop.f32.mrb[9].mxu1 }
 0x42f   :  { %v1721_v52 = vadd.f32 %v3754_v46, %v1720_v51  ;;  %v3781_v22 = vld [vmem:[%s4166_s18 + $0x8] sm:$0xff] }
 0x430   :  { %1785 = vst.msk [vmem:[%s4166_s18 + $0x28] sm:$0xff] %vm1779_vm11, %v1726_v61  ;;  %v3790_v53 = vld [vmem:[%s4166_s18] sm:$0xff]  ;;  %v1813_v57 = vsel %vm1779_vm11, %v3781_v22, 0.0  ;;  %v1855_v10 = vmul.f32 %v3781_v22, %v3781_v22 }
 0x431   :  { %1784 = vst.msk [vmem:[%s4166_s18 + $0x20] sm:$0xff] %vm1779_vm11, %v1721_v52  ;;  %v2525_v55 = vpop.f32.mrb[10].mxu1  ;;  %v1812_v56 = vsel %vm1779_vm11, %v3790_v53, 0.0  ;;  %v1854_v7 = vmul.f32 %v3790_v53, %v3790_v53 }
 0x432   :  { %v1736_v59 = vadd.f32 %v2525_v55, %v3754_v46  ;;  %v1730_v23 = vpop.f32.mrb[11].mxu1  ;;  %v1814_v58 = vadd.f32 %v1813_v57, %v1812_v56  ;;  %v1871_v29 = vsel %vm1779_vm11, %v1855_v10, 0.0 }
 0x433   :  { %v1731_v60 = vadd.f32 %v3754_v46, %v1730_v23  ;;  %v3814_v63 = vld [vmem:[%s4166_s18 + $0x18] sm:$0xff]  ;;  %v1870_v8 = vsel %vm1779_vm11, %v1854_v7, 0.0 }
 0x434   :  { %1787 = vst.msk [vmem:[%s4166_s18 + $0x38] sm:$0xff] %vm1779_vm11, %v1736_v59  ;;  %v3809_v62 = vld [vmem:[%s4166_s18 + $0x10] sm:$0xff]  ;;  %v1817_v14 = vsel %vm1779_vm11, %v3814_v63, 0.0  ;;  %v1872_v33 = vadd.f32 %v1871_v29, %v1870_v8  ;;  %v1857_v43 = vmul.f32 %v3814_v63, %v3814_v63 }
 0x435   :  { %1786 = vst.msk [vmem:[%s4166_s18 + $0x30] sm:$0xff] %vm1779_vm11, %v1731_v60  ;;  %v2528_v1 = vpop.f32.mrb[12].mxu1  ;;  %v1815_v3 = vsel %vm1779_vm11, %v3809_v62, 0.0  ;;  %v1856_v24 = vmul.f32 %v3809_v62, %v3809_v62 }
 0x436   :  { %v1746_v5 = vadd.f32 %v2528_v1, %v3754_v46  ;;  %v1740_v6 = vpop.f32.mrb[13].mxu1  ;;  %v1816_v2 = vadd.f32 %v1815_v3, %v1814_v58  ;;  %v1875_v56 = vsel %vm1779_vm11, %v1857_v43, 0.0 }
 0x437   :  { %v1741_v11 = vadd.f32 %v3754_v46, %v1740_v6  ;;  %v3842_v19 = vld [vmem:[%s4166_s18 + $0x28] sm:$0xff]  ;;  %v1873_v30 = vsel %vm1779_vm11, %v1856_v24, 0.0 }
 0x438   :  { %1789 = vst.msk [vmem:[%s4166_s18 + $0x48] sm:$0xff] %vm1779_vm11, %v1746_v5  ;;  %v3837_v18 = vld [vmem:[%s4166_s18 + $0x20] sm:$0xff]  ;;  %v1818_v21 = vadd.f32 %v1817_v14, %v1816_v2  ;;  %v1821_v31 = vsel %vm1779_vm11, %v3842_v19, 0.0  ;;  %v1874_v47 = vadd.f32 %v1873_v30, %v1872_v33  ;;  %v1859_v24 = vmul.f32 %v3842_v19, %v3842_v19 }
 0x439   :  { %1788 = vst.msk [vmem:[%s4166_s18 + $0x40] sm:$0xff] %vm1779_vm11, %v1741_v11  ;;  %v2531_v26 = vpop.f32.mrb[14].mxu1  ;;  %v1819_v40 = vsel %vm1779_vm11, %v3837_v18, 0.0  ;;  %v1858_v61 = vmul.f32 %v3837_v18, %v3837_v18 }
 0x43a   :  { %v1756_v27 = vadd.f32 %v2531_v26, %v3754_v46  ;;  %v1750_v28 = vpop.f32.mrb[15].mxu1  ;;  %v1820_v13 = vadd.f32 %v1819_v40, %v1818_v21  ;;  %v1876_v60 = vadd.f32 %v1875_v56, %v1874_v47 }
 0x43b   :  { %v1751_v25 = vadd.f32 %v3754_v46, %v1750_v28  ;;  %v3890_v17 = vld [vmem:[%s4166_s18 + $0x38] sm:$0xff]  ;;  %v1877_v7 = vsel %vm1779_vm11, %v1858_v61, 0.0 }
 0x43c   :  { %1791 = vst.msk [vmem:[%s4166_s18 + $0x58] sm:$0xff] %vm1779_vm11, %v1756_v27  ;;  %v3865_v37 = vld [vmem:[%s4166_s18 + $0x30] sm:$0xff]  ;;  %v1822_v44 = vadd.f32 %v1821_v31, %v1820_v13  ;;  %v1825_v23 = vsel %vm1779_vm11, %v3890_v17, 0.0  ;;  %v1878_v8 = vadd.f32 %v1877_v7, %v1876_v60 }
 0x43d   :  { %1790 = vst.msk [vmem:[%s4166_s18 + $0x50] sm:$0xff] %vm1779_vm11, %v1751_v25  ;;  %v2534_v16 = vpop.f32.mrb[16].mxu1  ;;  %v1823_v32 = vsel %vm1779_vm11, %v3865_v37, 0.0  ;;  %v1860_v25 = vmul.f32 %v3865_v37, %v3865_v37 }
 0x43e   :  { %v1766_v38 = vadd.f32 %v2534_v16, %v3754_v46  ;;  %v1760_v39 = vpop.f32.mrb[17].mxu1  ;;  %v1824_v49 = vadd.f32 %v1823_v32, %v1822_v44 }
 0x43f   :  { %v1761_v20 = vadd.f32 %v3754_v46, %v1760_v39  ;;  %v3881_v34 = vld [vmem:[%s4166_s18 + $0x48] sm:$0xff]  ;;  %v1879_v39 = vsel %vm1779_vm11, %v1859_v24, 0.0  ;;  %v1881_v61 = vsel %vm1779_vm11, %v1860_v25, 0.0 }
 0x440   :  { %1793 = vst.msk [vmem:[%s4166_s18 + $0x68] sm:$0xff] %vm1779_vm11, %v1766_v38  ;;  %v3895_v48 = vld [vmem:[%s4166_s18 + $0x40] sm:$0xff]  ;;  %v1863_v50 = vmul.f32 %v3881_v34, %v3881_v34  ;;  %v1834_v54 = vsel %vm1779_vm11, %v3881_v34, 0.0 }
 0x441   :  { %1792 = vst.msk [vmem:[%s4166_s18 + $0x60] sm:$0xff] %vm1779_vm11, %v1761_v20  ;;  %v2537_v41 = vpop.f32.mrb[18].mxu1  ;;  %v1833_v45 = vsel %vm1779_vm11, %v3895_v48, 0.0  ;;  %v1862_v51 = vmul.f32 %v3895_v48, %v3895_v48 }
 0x442   :  { %v1776_v52 = vadd.f32 %v2537_v41, %v3754_v46  ;;  %v1770_v55 = vpop.f32.mrb[19].mxu1  ;;  %v1835_v1 = vadd.f32 %v1834_v54, %v1833_v45  ;;  %v1892_v5 = vsel %vm1779_vm11, %v1863_v50, 0.0  ;;  %v1880_v41 = vadd.f32 %v1879_v39, %v1878_v8 }
 0x443   :  { %v1771_v57 = vadd.f32 %v3754_v46, %v1770_v55  ;;  %v3917_v59 = vld [vmem:[%s4166_s18 + $0x58] sm:$0xff]  ;;  %v1826_v46 = vadd.f32 %v1825_v23, %v1824_v49  ;;  %v1891_v3 = vsel %vm1779_vm11, %v1862_v51, 0.0  ;;  %v1861_v23 = vmul.f32 %v3890_v17, %v3890_v17 }
 0x444   :  { %1795 = vst.msk [vmem:[%s4166_s18 + $0x78] sm:$0xff] %vm1779_vm11, %v1776_v52  ;;  %v3928_v58 = vld [vmem:[%s4166_s18 + $0x50] sm:$0xff]  ;;  %v1865_v11 = vmul.f32 %v3917_v59, %v3917_v59  ;;  %v1838_v21 = vsel %vm1779_vm11, %v3917_v59, 0.0  ;;  %v1893_v26 = vadd.f32 %v1892_v5, %v1891_v3  ;;  %v1882_v5 = vadd.f32 %v1881_v61, %v1880_v41  ;;  %v2076_v41 = vld [vmem:[%s4167_s14 + $0x8] sm:$0xff]  ;;  %v2078_v61 = vld [vmem:[%s4167_s14 + $0x18] sm:$0xff] }
 0x445   :  { %1794 = vst.msk [vmem:[%s4166_s18 + $0x70] sm:$0xff] %vm1779_vm11, %v1771_v57  ;;  %v1836_v6 = vsel %vm1779_vm11, %v3928_v58, 0.0  ;;  %v1864_v2 = vmul.f32 %v3928_v58, %v3928_v58  ;;  %v1827_v28 = vrot.slane %v1826_v46, 4 }
 0x446   :  { %v1837_v10 = vadd.f32 %v1836_v6, %v1835_v1  ;;  %v1896_v32 = vsel %vm1779_vm11, %v1865_v11, 0.0 }
 0x447   :  { %v3946_v14 = vld [vmem:[%s4166_s18 + $0x68] sm:$0xff]  ;;  %v1894_v40 = vsel %vm1779_vm11, %v1864_v2, 0.0  ;;  %v1828_v49 = vadd.f32 %v1827_v28, %v1826_v46 }
 0x448   :  { %v3956_v27 = vld [vmem:[%s4166_s18 + $0x60] sm:$0xff]  ;;  %v1839_v13 = vadd.f32 %v1838_v21, %v1837_v10  ;;  %v1895_v44 = vadd.f32 %v1894_v40, %v1893_v26  ;;  %v1867_v16 = vmul.f32 %v3946_v14, %v3946_v14  ;;  %v1842_v38 = vsel %vm1779_vm11, %v3946_v14, 0.0 }
 0x449   :  { %v1840_v29 = vsel %vm1779_vm11, %v3956_v27, 0.0  ;;  %v1866_v31 = vmul.f32 %v3956_v27, %v3956_v27  ;;  %v1829_v1 = vrot.slane %v1828_v49, 2  ;;  %v1883_v10 = vsel %vm1779_vm11, %v1861_v23, 0.0  ;;  %v2164_v23 = vld [vmem:[%s4168_s16 + $0x10] sm:$0xff] }
 0x44a   :  { %v1841_v30 = vadd.f32 %v1840_v29, %v1839_v13  ;;  %v1897_v43 = vadd.f32 %v1896_v32, %v1895_v44  ;;  %v1900_v56 = vsel %vm1779_vm11, %v1867_v16, 0.0  ;;  %v1884_v26 = vadd.f32 %v1883_v10, %v1882_v5 }
 0x44b   :  { %v3970_v33 = vld [vmem:[%s4166_s18 + $0x78] sm:$0xff]  ;;  %v1898_v20 = vsel %vm1779_vm11, %v1866_v31, 0.0  ;;  %v1830_v21 = vadd.f32 %v1829_v1, %v1828_v49  ;;  %v2161_v1 = vld [vmem:[%s4170_s3] sm:$0x3] }
 0x44c   :  { %v3979_v47 = vld [vmem:[%s4166_s18 + $0x70] sm:$0xff]  ;;  %v1843_v50 = vadd.f32 %v1842_v38, %v1841_v30  ;;  %v1899_v51 = vadd.f32 %v1898_v20, %v1897_v43  ;;  %v1869_v55 = vmul.f32 %v3970_v33, %v3970_v33  ;;  %v1846_v57 = vsel %vm1779_vm11, %v3970_v33, 0.0 }
 0x44d   :  { %v1844_v45 = vsel %vm1779_vm11, %v3979_v47, 0.0  ;;  %v1868_v54 = vmul.f32 %v3979_v47, %v3979_v47  ;;  %v1831_v13 = vrot.slane %v1830_v21, 1  ;;  %v1885_v29 = vrot.slane %v1884_v26, 4 }
 0x44e   :  { %v1845_v52 = vadd.f32 %v1844_v45, %v1843_v50  ;;  %v1901_v60 = vadd.f32 %v1900_v56, %v1899_v51  ;;  %v1904_v7 = vsel %vm1779_vm11, %v1869_v55, 0.0  ;;  %v2163_v55 = vld [vmem:[%s4168_s16 + $0x8] sm:$0xff]  ;;  %v2074_v56 = vld [vmem:[%s4169_s2] sm:$0x3] }
 0x44f   :  { %v1902_v46 = vsel %vm1779_vm11, %v1868_v54, 0.0  ;;  %v1832_v44 = vadd.f32 %v1831_v13, %v1830_v21  ;;  %v1886_v16 = vadd.f32 %v1885_v29, %v1884_v26  ;;  %v2440_v26 = vld [vmem:[%s4173_s17] ss:$0 sm:$0xff] }
 0x450   :  { %v1847_v3 = vadd.f32 %v1846_v57, %v1845_v52  ;;  %v1903_v6 = vadd.f32 %v1902_v46, %v1901_v60  ;;  %v2165_v60 = vld [vmem:[%s4168_s16 + $0x18] sm:$0xff] }
 0x451   :  { %v1887_v39 = vrot.slane %v1886_v16, 2  ;;  %v2669_v46 = vpack.c.bf16 %v2165_v60, %v2164_v23 }
 0x452   :  { %v1848_v2 = vrot.slane %v1847_v3, 4  ;;  %v1905_v11 = vadd.f32 %v1904_v7, %v1903_v6 }
 0x453   :  { %v1888_v20 = vadd.f32 %v1887_v39, %v1886_v16 }
 0x454   :  { %v1849_v24 = vadd.f32 %v1848_v2, %v1847_v3  ;;  %v1906_v28 = vrot.slane %v1905_v11, 4 }
 0x455   :  { %v1889_v50 = vrot.slane %v1888_v20, 1 }
 0x456   :  { %v1850_v40 = vrot.slane %v1849_v24, 2  ;;  %v1907_v31 = vadd.f32 %v1906_v28, %v1905_v11 }
 0x458   :  { %v1851_v8 = vadd.f32 %v1850_v40, %v1849_v24  ;;  %v1908_v38 = vrot.slane %v1907_v31, 2 }
 0x45a   :  { %v1852_v25 = vrot.slane %v1851_v8, 1  ;;  %v1909_v43 = vadd.f32 %v1908_v38, %v1907_v31 }
 0x45c   :  { %v1853_v30 = vadd.f32 %v1852_v25, %v1851_v8  ;;  %v1910_v49 = vrot.slane %v1909_v43, 1 }
 0x45e   :  { %v1922_v32 = vsel %vm1232_vm10, %v1853_v30, %v1832_v44  ;;  %v1911_v45 = vadd.f32 %v1910_v49, %v1909_v43  ;;  %v2443_v49 = vld [vmem:[%s4174_s12] ss:$0 sm:$0xff] }
 0x45f   :  { %2555 = vmatmul.mubr.msk.f32.vlgmr.msra.gmra.mrb[20].mxu1 %vm1779_vm11, %v1922_v32 }
 0x460   :  { %2649 = vmatpush3.bf16.msra.mxu1 %v3717_v15  ;;  %2573 = vmatprep.mubr.msk.f32.mxu1 %vm2695_vm9, %v2686_v0  ;;  %v2075_v15 = vld [vmem:[%s4167_s14] sm:$0xff] }
 0x461   :  { %2650 = vmatprep.subr.bf16.mxu1 %v2687_v4  ;;  %v2660_v54 = vpack.c.bf16 %v2076_v41, %v2075_v15 }
 0x464   :  { %2652 = vmatpush3.bf16.msra.mxu1 %v3727_v36  ;;  %v1890_v36 = vadd.f32 %v1889_v50, %v1888_v20 }
 0x465   :  { %2653 = vmatprep.subr.bf16.mxu1 %v2687_v4 }
 0x466   :  { %v1997_v51 = vsel %vm1232_vm10, %v1911_v45, %v1890_v36 }
 0x468   :  { %2655 = vmatpush3.bf16.msra.mxu1 %v3736_v42  ;;  %v2077_v42 = vld [vmem:[%s4167_s14 + $0x10] sm:$0xff] }
 0x469   :  { %2656 = vmatprep.subr.bf16.mxu1 %v2687_v4  ;;  %v2663_v52 = vpack.c.bf16 %v2078_v61, %v2077_v42 }
 0x46c   :  { %2658 = vmatpush3.bf16.msra.mxu1 %v3746_v35  ;;  %v2162_v35 = vld [vmem:[%s4168_s16] sm:$0xff] }
 0x46d   :  { %2659 = vmatprep.subr.bf16.mxu1 %v2687_v4  ;;  %v2666_v57 = vpack.c.bf16 %v2163_v55, %v2162_v35 }
 0x46f   :  { %2574 = vmatmul.mubr.msk.f32.vlgmr.msra.gmra.mrb[22].mxu1 %vm1779_vm11, %v1997_v51 }
 0x470   :  { %2661 = vmatpush3.bf16.msra.mxu1 %v2660_v54  ;;  %2584 = vmatprep.mubr.msk.f32.mxu1 %vm2695_vm9, %v2686_v0 }
 0x471   :  { %2662 = vmatprep.subr.bf16.mxu1 %v2687_v4 }
 0x474   :  { %2664 = vmatpush3.bf16.msra.mxu1 %v2663_v52 }
 0x475   :  { %2665 = vmatprep.subr.bf16.mxu1 %v2687_v4 }
 0x477   :  { %2585 = vmatmul.mubr.msk.f32.vlgmr.msra.gmra.mrb[24].mxu1 %vm2086_vm12, %v2074_v56 }
 0x478   :  { %2667 = vmatpush3.bf16.msra.mxu1 %v2666_v57  ;;  %2595 = vmatprep.mubr.msk.f32.mxu1 %vm2695_vm9, %v2686_v0  ;;  %v2438_v0 = vld [vmem:[%s4171_s15] ss:$0 sm:$0xff] }
 0x479   :  { %2668 = vmatprep.subr.bf16.mxu1 %v2687_v4  ;;  %v2442_v4 = vld [vmem:[%s4172_s11] ss:$0 sm:$0xff] }
 0x47c   :  { %2670 = vmatpush3.bf16.msra.mxu1 %v2669_v46 }
 0x47f   :  { %2596 = vmatmul.mubr.msk.f32.vlgmr.msra.gmra.mrb[26].mxu1 %vm2086_vm12, %v2161_v1 }
 0x532   :  { %v1991_v3 = vpop.f32.mrb[20].mxu1 }
 0x533   :  { %v2556_v5 = vpop.f32.mrb[21].mxu1  ;;  %v2070_v6 = vmul.f32 %v1991_v3, %v1991_v3 }
 0x542   :  { %v2066_v2 = vpop.f32.mrb[22].mxu1 }
 0x543   :  { %v2071_v7 = vsub.f32 %v2066_v2, %v2070_v6  ;;  %v2575_v10 = vpop.f32.mrb[23].mxu1 }
 0x545   :  { %v2072_v11 = vadd.f32 1e-05, %v2071_v7 }
 0x547   :  { %2684 = vrsqrt.f32 %v2072_v11 }
 0x54a   :  { %v2156_v21 = vpop.f32.mrb[24].mxu1 }
 0x54b   :  { %v2586_v24 = vpop.f32.mrb[25].mxu1  ;;  %v2157_v28 = vadd.f32 %v2438_v0, %v2156_v21 }
 0x54d   :  { %v2160_v44 = vmax.f32 %v2157_v28, 0.0 }
 0x551   :  { %v2685_v40 = vpop.eup %2684 }
 0x552   :  { %v2242_v13 = vpop.f32.mrb[26].mxu1  ;;  %v2269_v8 = vmul.f32 %v2685_v40, %v2442_v4 }
 0x553   :  { %v2243_v29 = vadd.f32 %v2440_v26, %v2242_v13  ;;  %v2597_v25 = vpop.f32.mrb[27].mxu1 }
 0x554   :  { %v2271_v31 = vmul.f32 %v2269_v8, %v1991_v3  ;;  %v2287_v32 = vrot.slane %v2269_v8, %v3563_v9 }
 0x555   :  { %v2246_v30 = vmax.f32 %v2243_v29, 0.0 }
 0x556   :  { %v2288_v38 = vcombine.high %v2287_v32, %v2287_v32  ;;  %v2295_v50 = vrot.slane %v2287_v32, %v3563_v9  ;;  %v2278_v45 = vsub.f32 %v2443_v49, %v2271_v31 }
 0x557   :  { %v2247_v16 = vadd.f32 %v2246_v30, %v2160_v44 }
 0x558   :  { %v2302_v15 = vrot.slane %v2288_v38, %v3563_v9  ;;  %v2306_v54 = vrot.slane %v2295_v50, %v3567_v12 }
 0x559   :  { %2252 = vrot.lane.b32.xlu1 %v2247_v16, %s2690_s23  ;;  %2249 = vrot.lane.b32.xlu0 %v2247_v16, %s2688_s0 }
 0x55a   :  { %v2310_v51 = vrot.slane %v2302_v15, %v3567_v12  ;;  %v2313_v35 = vmul.f32 %v2306_v54, %v3790_v53  ;;  %v2314_v55 = vmul.f32 %v2306_v54, %v3781_v22  ;;  %v2315_v56 = vmul.f32 %v2306_v54, %v3809_v62 }
 0x55b   :  { %v2316_v57 = vmul.f32 %v2306_v54, %v3814_v63  ;;  %v2317_v23 = vmul.f32 %v2306_v54, %v3837_v18  ;;  %v2318_v60 = vmul.f32 %v2306_v54, %v3842_v19  ;;  %v2319_v3 = vmul.f32 %v2306_v54, %v3865_v37 }
 0x55c   :  { %v2320_v5 = vmul.f32 %v2306_v54, %v3890_v17  ;;  %v2321_v6 = vmul.f32 %v2310_v51, %v3895_v48  ;;  %v2322_v53 = vmul.f32 %v2310_v51, %v3881_v34  ;;  %v2323_v22 = vmul.f32 %v2310_v51, %v3928_v58 }
 0x55d   :  { %2255 = vrot.lane.b32.xlu0 %v2247_v16, %s2689_s4  ;;  %v2324_v62 = vmul.f32 %v2310_v51, %v3917_v59  ;;  %v2325_v19 = vmul.f32 %v2310_v51, %v3956_v27  ;;  %v2326_v2 = vmul.f32 %v2310_v51, %v3946_v14  ;;  %v2327_v37 = vmul.f32 %v2310_v51, %v3979_v47 }
 0x55e   :  { %v2328_v17 = vmul.f32 %v2310_v51, %v3970_v33 }
 0x5cb   :  { %v2250_v39 = vpop.permute.xlu0 %2249  ;;  %v2253_v43 = vpop.permute.xlu1 %2252 }
 0x5cc   :  { %v2258_v20 = vsel %vm59_vm0, %v2247_v16, %v2250_v39 }
 0x5cd   :  { %v2259_v41 = vsel %vm2086_vm12, %v2258_v20, %v2253_v43 }
 0x5cf   :  { %v2256_v36 = vpop.permute.xlu0 %2255 }
 0x5d0   :  { %v2261_v42 = vsel %vm2260_vm13, %v2259_v41, %v2256_v36 }
 0x5d1   :  { %v2279_v61 = vadd.f32 %v2278_v45, %v2261_v42 }
 0x5d3   :  { %v2336_v52 = vrot.slane %v2279_v61, %v3563_v9 }
 0x5d5   :  { %v2337_v46 = vcombine.high %v2336_v52, %v2336_v52  ;;  %v2344_v1 = vrot.slane %v2336_v52, %v3563_v9 }
 0x5d7   :  { %v2351_v63 = vrot.slane %v2337_v46, %v3563_v9  ;;  %v2355_v18 = vrot.slane %v2344_v1, %v3567_v12 }
 0x5d9   :  { %v2359_v48 = vrot.slane %v2351_v63, %v3567_v12  ;;  %v2362_v7 = vadd.f32 %v2355_v18, %v2313_v35  ;;  %v2363_v34 = vadd.f32 %v2355_v18, %v2314_v55  ;;  %v2364_v10 = vadd.f32 %v2355_v18, %v2315_v56 }
 0x5da   :  { %v2365_v58 = vadd.f32 %v2355_v18, %v2316_v57  ;;  %v2366_v11 = vadd.f32 %v2355_v18, %v2317_v23  ;;  %v2367_v59 = vadd.f32 %v2355_v18, %v2318_v60  ;;  %v2368_v21 = vadd.f32 %v2355_v18, %v2319_v3 }
 0x5db   :  { %v2369_v9 = vadd.f32 %v2355_v18, %v2320_v5  ;;  %v2370_v24 = vadd.f32 %v2359_v48, %v2321_v6  ;;  %v2371_v0 = vadd.f32 %v2359_v48, %v2322_v53  ;;  %v2372_v4 = vadd.f32 %v2359_v48, %v2323_v22  ;;  %2378 = vst.msk [vmem:[%s4166_s18] sm:$0xff] %vm1779_vm11, %v2362_v7 }
 0x5dc   :  { %2379 = vst.msk [vmem:[%s4166_s18 + $0x8] sm:$0xff] %vm1779_vm11, %v2363_v34  ;;  %2380 = vst.msk [vmem:[%s4166_s18 + $0x10] sm:$0xff] %vm1779_vm11, %v2364_v10  ;;  %v2373_v12 = vadd.f32 %v2359_v48, %v2324_v62  ;;  %v2374_v14 = vadd.f32 %v2359_v48, %v2325_v19  ;;  %v2375_v27 = vadd.f32 %v2359_v48, %v2326_v2 }
 0x5dd   :  { %v2376_v33 = vadd.f32 %v2359_v48, %v2327_v37  ;;  %2381 = vst.msk [vmem:[%s4166_s18 + $0x18] sm:$0xff] %vm1779_vm11, %v2365_v58  ;;  %2382 = vst.msk [vmem:[%s4166_s18 + $0x20] sm:$0xff] %vm1779_vm11, %v2366_v11  ;;  %v2377_v47 = vadd.f32 %v2359_v48, %v2328_v17 }
 0x5de   :  { %2383 = vst.msk [vmem:[%s4166_s18 + $0x28] sm:$0xff] %vm1779_vm11, %v2367_v59  ;;  %2384 = vst.msk [vmem:[%s4166_s18 + $0x30] sm:$0xff] %vm1779_vm11, %v2368_v21 }
 0x5df   :  { %2385 = vst.msk [vmem:[%s4166_s18 + $0x38] sm:$0xff] %vm1779_vm11, %v2369_v9  ;;  %2386 = vst.msk [vmem:[%s4166_s18 + $0x40] sm:$0xff] %vm1779_vm11, %v2370_v24 }
 0x5e0   :  { %2387 = vst.msk [vmem:[%s4166_s18 + $0x48] sm:$0xff] %vm1779_vm11, %v2371_v0  ;;  %2388 = vst.msk [vmem:[%s4166_s18 + $0x50] sm:$0xff] %vm1779_vm11, %v2372_v4 }
 0x5e1   :  { %2389 = vst.msk [vmem:[%s4166_s18 + $0x58] sm:$0xff] %vm1779_vm11, %v2373_v12  ;;  %2390 = vst.msk [vmem:[%s4166_s18 + $0x60] sm:$0xff] %vm1779_vm11, %v2374_v14 }
 0x5e2   :  { %2391 = vst.msk [vmem:[%s4166_s18 + $0x68] sm:$0xff] %vm1779_vm11, %v2375_v27  ;;  %2392 = vst.msk [vmem:[%s4166_s18 + $0x70] sm:$0xff] %vm1779_vm11, %v2376_v33 }
 0x5e3   :  { %2393 = vst.msk [vmem:[%s4166_s18 + $0x78] sm:$0xff] %vm1779_vm11, %v2377_v47 }

</bundles_post_ra>
